<compile_context>
chip_gen: v7x
topology: tpu7x:2x2x1
jax: 0.10.0
libtpu: 0.0.40
codegen_flags: <defaults>
</compile_context>

<pallas_src>
import functools
import math

import jax
import jax.numpy as jnp
import numpy as np
from jax.experimental import pallas as pl
from jax.experimental.pallas import tpu as pltpu


def _round_up(x, m):
    return (x + m - 1) // m * m


# ------------------------------ Pallas kernel ------------------------------- #

def _conv_layer_kernel(offsets, tl, cin, cout_p, use_fused, activation,
                       x_ref, w_ref, b_ref, o_ref):
    """o[0] = act(W @ im2col(x)^T + b) for one (image, row-tile) grid step.

    x_ref: (1, Lx, Cin)       flattened zero-padded image (resident across row tiles)
    w_ref: (Cout_p, K*K*Cin)  im2col weight matrix (tap-major, channel-minor)
    b_ref: (Cout_p, 1)
    o_ref: (1, Cout_p, TL)    lane-dense output tile (TL rows of the padded grid)
    """
    t = pl.program_id(1)
    base = pl.multiple_of(t * tl, tl)           # aligned dynamic start of this row tile

    if use_fused:
        # Lane-dense channels: concat along lanes is plain vreg placement, one
        # MXU contraction of depth K*K*Cin.
        patches = jnp.concatenate(
            [x_ref[0, pl.ds(base + off, tl), :] for off in offsets], axis=1)
        acc = jax.lax.dot_general(
            w_ref[...], patches,
            dimension_numbers=(((1,), (1,)), ((), ())),
            preferred_element_type=jnp.float32)
    else:
        # Small Cin: K*K accumulated per-tap dots; each tap is a direct ref load
        # (no register-resident window, no lane-packing concat).
        acc = jnp.zeros((cout_p, tl), jnp.float32)
        for j, off in enumerate(offsets):
            tap = x_ref[0, pl.ds(base + off, tl), :]           # (TL, Cin)
            w_tap = w_ref[:, j * cin:(j + 1) * cin]            # (Cout_p, Cin)
            acc = acc + jax.lax.dot_general(
                w_tap, tap,
                dimension_numbers=(((1,), (1,)), ((), ())),
                preferred_element_type=jnp.float32)

    acc = acc + b_ref[...]
    if activation == "relu":
        acc = jnp.maximum(acc, 0.0)
    elif activation == "tanh":
        acc = jnp.tanh(acc)
    # activation is None -> identity (unsupported strings are rejected in the wrapper).

    o_ref[0] = acc.astype(o_ref.dtype)


# ------------------------------ glue / wrapper ------------------------------ #

def conv_layer_forward(params, x, *, activation="relu", row_tile=None):
    """Equivalent of ConvLayer.forward(x) with stride=1, norm=None. x is NCHW."""
    if activation not in (None, "relu", "tanh"):
        # TODO(synk): spiking activations from the original module are not implemented.
        raise NotImplementedError(f"activation {activation!r} not supported")
    # TODO(synk): stride > 1 and norm='BN'/'IN' (running-stats batch/instance norm)
    # are not implemented; PyTorch-module defaults (stride=1, norm=None) only.

    N, Cin, H, W = x.shape
    K = params["K"]
    Cout = params["b_raw"].shape[0]
    assert params["w2"].shape == (Cout, K * K * Cin), "channel mismatch"

    p = K // 2
    Hp = H + 2 * p
    Wp = _round_up(W + 2 * p, 8)      # sublane-aligned tap offsets (kh*Wp % 8 == 0)
    Cout_p = _round_up(Cout, 8)       # f32 sublane multiple -> full-vreg, unmasked stores
    kkc = K * K * Cin

    # Row tile: single tile for small images, else 256-512 capped so the
    # (Cout_p, TL) f32 accumulator stays <= ~128 KB.
    L = H * Wp                        # flattened rows that must be computed
    if row_tile is None:
        acc_cap = max(128, (128 * 1024 // (Cout_p * 4)) // 128 * 128)
        TL = min(_round_up(L, 128), min(512, acc_cap))
    else:
        assert row_tile % 128 == 0, "row_tile must be a multiple of 128"
        TL = row_tile
    T = pl.cdiv(L, TL)
    Lo = T * TL                       # rows computed (padded trailing rows dropped)
    max_off = (K - 1) * Wp + (K - 1)  # largest tap offset
    Lx = _round_up(max(Hp * Wp, Lo + max_off), 8)

    # NCHW -> zero-padded NHWC -> (N, Lx, Cin) with trailing zero rows so every
    # tap slice of every tile stays in bounds.
    # TODO(synk): for small Cin this layout uses only Cin of 128 lanes; a
    # space-to-depth packing of a spatial factor onto the lane axis would cut the
    # VMEM / lane-bandwidth waste further (different im2col structure required).
    xh = jnp.transpose(x, (0, 2, 3, 1))
    xh = jnp.pad(xh, ((0, 0), (p, p), (p, Wp - W - p), (0, 0)))
    x_ext = jnp.pad(xh.reshape(N, Hp * Wp, Cin), ((0, 0), (0, Lx - Hp * Wp), (0, 0)))

    w2, b2 = params["w2"], params["b2"]
    if Cout_p != Cout:
        w2 = jnp.pad(w2, ((0, Cout_p - Cout), (0, 0)))
        b2 = jnp.pad(b2, ((0, Cout_p - Cout), (0, 0)))

    offsets = tuple(kh * Wp + kw for kh in range(K) for kw in range(K))
    use_fused = Cin >= 128            # lane-dense taps -> single im2col matmul
    kernel = functools.partial(_conv_layer_kernel, offsets, TL, Cin, Cout_p,
                               use_fused, activation)

    cost = pl.CostEstimate(
        flops=int(2 * N * Lo * kkc * Cout_p),
        transcendentals=int(N * Lo * Cout_p) if activation == "tanh" else 0,
        bytes_accessed=int(4 * (x_ext.size + w2.size + b2.size + N * Cout_p * Lo)))

    # Explicit VMEM budget (double-buffered blocks, lane/sublane padding included).
    def _pad8(r):
        return _round_up(r, 8)

    def _pad128(c):
        return _round_up(c, 128)

    vmem_need = 4 * (2 * _pad8(Lx) * _pad128(Cin)          # resident image block
                     + 2 * _pad8(Cout_p) * _pad128(kkc)    # weights
                     + 2 * _pad8(Cout_p) * _pad128(1)      # bias
                     + 2 * _pad8(Cout_p) * _pad128(TL))    # output tile
    vmem_limit = int(min(max(2 * vmem_need, 32 * 1024 * 1024), 100 * 1024 * 1024))
    # TODO(synk): for very large images on v7x (64 MiB VMEM) switch the input spec
    # to halo-windowed per-t blocks instead of keeping the whole image resident.
    # TODO(synk): mark the constant-index weight/bias specs pipeline_mode=pl.Buffered(1)
    # to reclaim their second buffer once single-buffered pipeline_mode is supported.

    out_flat = pl.pallas_call(
        kernel,
        grid=(N, T),
        in_specs=[
            pl.BlockSpec((1, Lx, Cin), lambda n, t: (n, 0, 0)),   # resident across t
            pl.BlockSpec((Cout_p, kkc), lambda n, t: (0, 0)),
            pl.BlockSpec((Cout_p, 1), lambda n, t: (0, 0)),
        ],
        out_specs=pl.BlockSpec((1, Cout_p, TL), lambda n, t: (n, 0, t)),
        out_shape=jax.ShapeDtypeStruct((N, Cout_p, Lo), x.dtype),
        compiler_params=pltpu.CompilerParams(
            # Megacore split lands on N: the input block index ignores t, so
            # sharding T across cores would duplicate the per-image DMA.
            dimension_semantics=("parallel", "arbitrary"),
            vmem_limit_bytes=vmem_limit),
        cost_estimate=cost,
    )(x_ext, w2, b2)

    # Valid output rows are l = y*Wp + x with y < H, x < W (already NCHW order).
    out = out_flat[:, :Cout, :H * Wp].reshape(N, Cout, H, Wp)[:, :, :, :W]
    return out


# --------------------------- parameter initialization ----------------------- #

def init_params(key, in_channels, out_channels, kernel_size, w_scale=None,
                dtype=jnp.float32):
    """PyTorch-like Conv2d init; also precomputes the im2col weight layout."""
    K = kernel_size
    k_w, k_b = jax.random.split(key)
    if w_scale is not None:
        w = jax.random.uniform(k_w, (out_channels, in_channels, K, K), dtype,
                               -w_scale, w_scale)
        b = jnp.zeros((out_channels,), dtype)
    else:
        bound = 1.0 / math.sqrt(in_channels * K * K)
        w = jax.random.uniform(k_w, (out_channels, in_channels, K, K), dtype,
                               -bound, bound)
        b = jax.random.uniform(k_b, (out_channels,), dtype, -bound, bound)
    # (Cout, Cin, K, K) -> (Cout, K, K, Cin) -> (Cout, K*K*Cin): tap-major,
    # channel-minor (matches the in-kernel per-tap weight slices / concat order).
    w2 = jnp.transpose(w, (0, 2, 3, 1)).reshape(out_channels, K * K * in_channels)
    return dict(K=K, w_oihw=w, b_raw=b, w2=w2, b2=b.reshape(out_channels, 1))


# ------------------------------ pure-JAX reference -------------------------- #

def reference_forward(params, x, activation="relu"):
    p = params["K"] // 2
    y = jax.lax.conv_general_dilated(
        x, params["w_oihw"], window_strides=(1, 1), padding=((p, p), (p, p)),
        dimension_numbers=("NCHW", "OIHW", "NCHW"))
    y = y + params["b_raw"].reshape(1, -1, 1, 1)
    if activation == "relu":
        y = jax.nn.relu(y)
    elif activation == "tanh":
        y = jnp.tanh(y)
    return y


# ------------------------------------ main ---------------------------------- #

if __name__ == "__main__":
    key = jax.random.PRNGKey(0)
    k_param, k_x = jax.random.split(key)

    N, Cin, Cout, H, W, K = 2, 4, 8, 16, 16, 3
    params = init_params(k_param, in_channels=Cin, out_channels=Cout, kernel_size=K)
    x = jax.random.normal(k_x, (N, Cin, H, W), jnp.float32)

    fwd = jax.jit(lambda xx: conv_layer_forward(params, xx))
    out = jax.block_until_ready(fwd(x))

    ref = reference_forward(params, x)
    assert out.shape == (N, Cout, H, W)
    np.testing.assert_allclose(np.asarray(out), np.asarray(ref), atol=1e-5, rtol=1e-5)
    print("KERNEL_OK")
</pallas_src>

<mosaic_0001>
module attributes {stable_mosaic.version = 11 : i64} {
  func.func @_conv_layer_kernel(%arg0: i32, %arg1: i32, %arg2: memref<1x440x4xf32, #tpu.memory_space<vmem>>, %arg3: memref<8x36xf32, #tpu.memory_space<vmem>>, %arg4: memref<8x1xf32, #tpu.memory_space<vmem>>, %arg5: memref<1x8x384xf32, #tpu.memory_space<vmem>>) attributes {dimension_semantics = [#tpu.dimension_semantics<parallel>, #tpu.dimension_semantics<arbitrary>], iteration_bounds = array<i64: 2, 1>, scalar_prefetch = 0 : i64, scratch_operands = 0 : i64, tpu.core_type = #tpu.core_type<tc>, window_params = [{transform_indices = @transform_0, window_bounds = array<i64: 1, 440, 4>}, {pipeline_mode = #tpu.pipeline_mode<synchronous>, transform_indices = @transform_1, window_bounds = array<i64: 8, 36>}, {pipeline_mode = #tpu.pipeline_mode<synchronous>, transform_indices = @transform_2, window_bounds = array<i64: 8, 1>}, {transform_indices = @transform_3, window_bounds = array<i64: 1, 8, 384>}]} {
    %c384_i32 = arith.constant 384 : i32
    %0 = arith.muli %arg1, %c384_i32 : i32
    %1 = tpu.assume_multiple %0, 384 : i32
    %cst = arith.constant 0.000000e+00 : f32
    %2 = vector.broadcast %cst : f32 to vector<8x384xf32>
    %c0_i32 = arith.constant 0 : i32
    %3 = arith.addi %1, %c0_i32 : i32
    %c0 = arith.constant 0 : index
    %4 = arith.index_cast %3 : i32 to index
    %c0_0 = arith.constant 0 : index
    %5 = vector.load %arg2[%c0, %4, %c0_0] : memref<1x440x4xf32, #tpu.memory_space<vmem>>, vector<1x384x4xf32>
    %6 = vector.shape_cast %5 : vector<1x384x4xf32> to vector<384x4xf32>
    %c0_1 = arith.constant 0 : index
    %c0_2 = arith.constant 0 : index
    %7 = vector.load %arg3[%c0_1, %c0_2] : memref<8x36xf32, #tpu.memory_space<vmem>>, vector<8x4xf32>
    %cst_3 = arith.constant dense<0.000000e+00> : vector<8x384xf32>
    %8 = tpu.matmul %7, %6, %cst_3 {dimension_numbers = #tpu.dot_dimension_numbers<[1], [1], [0], [0], [0, 0, 1, 0], [], []>} : vector<8x4xf32>, vector<384x4xf32>, vector<8x384xf32> -> vector<8x384xf32>
    %9 = arith.addf %2, %8 : vector<8x384xf32>
    %c1_i32 = arith.constant 1 : i32
    %10 = arith.addi %1, %c1_i32 : i32
    %c0_4 = arith.constant 0 : index
    %11 = arith.index_cast %10 : i32 to index
    %c0_5 = arith.constant 0 : index
    %12 = vector.load %arg2[%c0_4, %11, %c0_5] : memref<1x440x4xf32, #tpu.memory_space<vmem>>, vector<1x384x4xf32>
    %13 = vector.shape_cast %12 : vector<1x384x4xf32> to vector<384x4xf32>
    %c0_6 = arith.constant 0 : index
    %c4 = arith.constant 4 : index
    %14 = vector.load %arg3[%c0_6, %c4] : memref<8x36xf32, #tpu.memory_space<vmem>>, vector<8x4xf32>
    %cst_7 = arith.constant dense<0.000000e+00> : vector<8x384xf32>
    %15 = tpu.matmul %14, %13, %cst_7 {dimension_numbers = #tpu.dot_dimension_numbers<[1], [1], [0], [0], [0, 0, 1, 0], [], []>} : vector<8x4xf32>, vector<384x4xf32>, vector<8x384xf32> -> vector<8x384xf32>
    %16 = arith.addf %9, %15 : vector<8x384xf32>
    %c2_i32 = arith.constant 2 : i32
    %17 = arith.addi %1, %c2_i32 : i32
    %c0_8 = arith.constant 0 : index
    %18 = arith.index_cast %17 : i32 to index
    %c0_9 = arith.constant 0 : index
    %19 = vector.load %arg2[%c0_8, %18, %c0_9] : memref<1x440x4xf32, #tpu.memory_space<vmem>>, vector<1x384x4xf32>
    %20 = vector.shape_cast %19 : vector<1x384x4xf32> to vector<384x4xf32>
    %c0_10 = arith.constant 0 : index
    %c8 = arith.constant 8 : index
    %21 = vector.load %arg3[%c0_10, %c8] : memref<8x36xf32, #tpu.memory_space<vmem>>, vector<8x4xf32>
    %cst_11 = arith.constant dense<0.000000e+00> : vector<8x384xf32>
    %22 = tpu.matmul %21, %20, %cst_11 {dimension_numbers = #tpu.dot_dimension_numbers<[1], [1], [0], [0], [0, 0, 1, 0], [], []>} : vector<8x4xf32>, vector<384x4xf32>, vector<8x384xf32> -> vector<8x384xf32>
    %23 = arith.addf %16, %22 : vector<8x384xf32>
    %c24_i32 = arith.constant 24 : i32
    %24 = arith.addi %1, %c24_i32 : i32
    %c0_12 = arith.constant 0 : index
    %25 = arith.index_cast %24 : i32 to index
    %c0_13 = arith.constant 0 : index
    %26 = vector.load %arg2[%c0_12, %25, %c0_13] : memref<1x440x4xf32, #tpu.memory_space<vmem>>, vector<1x384x4xf32>
    %27 = vector.shape_cast %26 : vector<1x384x4xf32> to vector<384x4xf32>
    %c0_14 = arith.constant 0 : index
    %c12 = arith.constant 12 : index
    %28 = vector.load %arg3[%c0_14, %c12] : memref<8x36xf32, #tpu.memory_space<vmem>>, vector<8x4xf32>
    %cst_15 = arith.constant dense<0.000000e+00> : vector<8x384xf32>
    %29 = tpu.matmul %28, %27, %cst_15 {dimension_numbers = #tpu.dot_dimension_numbers<[1], [1], [0], [0], [0, 0, 1, 0], [], []>} : vector<8x4xf32>, vector<384x4xf32>, vector<8x384xf32> -> vector<8x384xf32>
    %30 = arith.addf %23, %29 : vector<8x384xf32>
    %c25_i32 = arith.constant 25 : i32
    %31 = arith.addi %1, %c25_i32 : i32
    %c0_16 = arith.constant 0 : index
    %32 = arith.index_cast %31 : i32 to index
    %c0_17 = arith.constant 0 : index
    %33 = vector.load %arg2[%c0_16, %32, %c0_17] : memref<1x440x4xf32, #tpu.memory_space<vmem>>, vector<1x384x4xf32>
    %34 = vector.shape_cast %33 : vector<1x384x4xf32> to vector<384x4xf32>
    %c0_18 = arith.constant 0 : index
    %c16 = arith.constant 16 : index
    %35 = vector.load %arg3[%c0_18, %c16] : memref<8x36xf32, #tpu.memory_space<vmem>>, vector<8x4xf32>
    %cst_19 = arith.constant dense<0.000000e+00> : vector<8x384xf32>
    %36 = tpu.matmul %35, %34, %cst_19 {dimension_numbers = #tpu.dot_dimension_numbers<[1], [1], [0], [0], [0, 0, 1, 0], [], []>} : vector<8x4xf32>, vector<384x4xf32>, vector<8x384xf32> -> vector<8x384xf32>
    %37 = arith.addf %30, %36 : vector<8x384xf32>
    %c26_i32 = arith.constant 26 : i32
    %38 = arith.addi %1, %c26_i32 : i32
    %c0_20 = arith.constant 0 : index
    %39 = arith.index_cast %38 : i32 to index
    %c0_21 = arith.constant 0 : index
    %40 = vector.load %arg2[%c0_20, %39, %c0_21] : memref<1x440x4xf32, #tpu.memory_space<vmem>>, vector<1x384x4xf32>
    %41 = vector.shape_cast %40 : vector<1x384x4xf32> to vector<384x4xf32>
    %c0_22 = arith.constant 0 : index
    %c20 = arith.constant 20 : index
    %42 = vector.load %arg3[%c0_22, %c20] : memref<8x36xf32, #tpu.memory_space<vmem>>, vector<8x4xf32>
    %cst_23 = arith.constant dense<0.000000e+00> : vector<8x384xf32>
    %43 = tpu.matmul %42, %41, %cst_23 {dimension_numbers = #tpu.dot_dimension_numbers<[1], [1], [0], [0], [0, 0, 1, 0], [], []>} : vector<8x4xf32>, vector<384x4xf32>, vector<8x384xf32> -> vector<8x384xf32>
    %44 = arith.addf %37, %43 : vector<8x384xf32>
    %c48_i32 = arith.constant 48 : i32
    %45 = arith.addi %1, %c48_i32 : i32
    %c0_24 = arith.constant 0 : index
    %46 = arith.index_cast %45 : i32 to index
    %c0_25 = arith.constant 0 : index
    %47 = vector.load %arg2[%c0_24, %46, %c0_25] : memref<1x440x4xf32, #tpu.memory_space<vmem>>, vector<1x384x4xf32>
    %48 = vector.shape_cast %47 : vector<1x384x4xf32> to vector<384x4xf32>
    %c0_26 = arith.constant 0 : index
    %c24 = arith.constant 24 : index
    %49 = vector.load %arg3[%c0_26, %c24] : memref<8x36xf32, #tpu.memory_space<vmem>>, vector<8x4xf32>
    %cst_27 = arith.constant dense<0.000000e+00> : vector<8x384xf32>
    %50 = tpu.matmul %49, %48, %cst_27 {dimension_numbers = #tpu.dot_dimension_numbers<[1], [1], [0], [0], [0, 0, 1, 0], [], []>} : vector<8x4xf32>, vector<384x4xf32>, vector<8x384xf32> -> vector<8x384xf32>
    %51 = arith.addf %44, %50 : vector<8x384xf32>
    %c49_i32 = arith.constant 49 : i32
    %52 = arith.addi %1, %c49_i32 : i32
    %c0_28 = arith.constant 0 : index
    %53 = arith.index_cast %52 : i32 to index
    %c0_29 = arith.constant 0 : index
    %54 = vector.load %arg2[%c0_28, %53, %c0_29] : memref<1x440x4xf32, #tpu.memory_space<vmem>>, vector<1x384x4xf32>
    %55 = vector.shape_cast %54 : vector<1x384x4xf32> to vector<384x4xf32>
    %c0_30 = arith.constant 0 : index
    %c28 = arith.constant 28 : index
    %56 = vector.load %arg3[%c0_30, %c28] : memref<8x36xf32, #tpu.memory_space<vmem>>, vector<8x4xf32>
    %cst_31 = arith.constant dense<0.000000e+00> : vector<8x384xf32>
    %57 = tpu.matmul %56, %55, %cst_31 {dimension_numbers = #tpu.dot_dimension_numbers<[1], [1], [0], [0], [0, 0, 1, 0], [], []>} : vector<8x4xf32>, vector<384x4xf32>, vector<8x384xf32> -> vector<8x384xf32>
    %58 = arith.addf %51, %57 : vector<8x384xf32>
    %c50_i32 = arith.constant 50 : i32
    %59 = arith.addi %1, %c50_i32 : i32
    %c0_32 = arith.constant 0 : index
    %60 = arith.index_cast %59 : i32 to index
    %c0_33 = arith.constant 0 : index
    %61 = vector.load %arg2[%c0_32, %60, %c0_33] : memref<1x440x4xf32, #tpu.memory_space<vmem>>, vector<1x384x4xf32>
    %62 = vector.shape_cast %61 : vector<1x384x4xf32> to vector<384x4xf32>
    %c0_34 = arith.constant 0 : index
    %c32 = arith.constant 32 : index
    %63 = vector.load %arg3[%c0_34, %c32] : memref<8x36xf32, #tpu.memory_space<vmem>>, vector<8x4xf32>
    %cst_35 = arith.constant dense<0.000000e+00> : vector<8x384xf32>
    %64 = tpu.matmul %63, %62, %cst_35 {dimension_numbers = #tpu.dot_dimension_numbers<[1], [1], [0], [0], [0, 0, 1, 0], [], []>} : vector<8x4xf32>, vector<384x4xf32>, vector<8x384xf32> -> vector<8x384xf32>
    %65 = arith.addf %58, %64 : vector<8x384xf32>
    %c0_36 = arith.constant 0 : index
    %c0_37 = arith.constant 0 : index
    %66 = vector.load %arg4[%c0_36, %c0_37] : memref<8x1xf32, #tpu.memory_space<vmem>>, vector<8x1xf32>
    %67 = vector.broadcast %66 : vector<8x1xf32> to vector<8x384xf32>
    %68 = arith.addf %65, %67 : vector<8x384xf32>
    %cst_38 = arith.constant 0.000000e+00 : f32
    %69 = vector.broadcast %cst_38 : f32 to vector<8x384xf32>
    %70 = arith.maximumf %68, %69 : vector<8x384xf32>
    %c0_39 = arith.constant 0 : index
    %c0_40 = arith.constant 0 : index
    %c0_41 = arith.constant 0 : index
    %71 = vector.load %arg5[%c0_39, %c0_40, %c0_41] : memref<1x8x384xf32, #tpu.memory_space<vmem>>, vector<1x8x384xf32>
    %72 = vector.shape_cast %71 : vector<1x8x384xf32> to vector<8x384xf32>
    %73 = vector.shape_cast %70 : vector<8x384xf32> to vector<1x8x384xf32>
    tpu.vector_store %arg5[%c0_39, %c0_40, %c0_41], %73 {strides = array<i32>} : memref<1x8x384xf32, #tpu.memory_space<vmem>>, vector<1x8x384xf32>,
    return
  }
  func.func @transform_0(%arg0: i32, %arg1: i32) -> (i32, i32, i32) {
    %c0_i32 = arith.constant 0 : i32
    %c0_i32_0 = arith.constant 0 : i32
    %c0_i32_1 = arith.constant 0 : i32
    return %arg0, %c0_i32, %c0_i32_0 : i32, i32, i32
  }
  func.func @transform_1(%arg0: i32, %arg1: i32) -> (i32, i32) {
    %c0_i32 = arith.constant 0 : i32
    %c0_i32_0 = arith.constant 0 : i32
    %c0_i32_1 = arith.constant 0 : i32
    return %c0_i32, %c0_i32_0 : i32, i32
  }
  func.func @transform_2(%arg0: i32, %arg1: i32) -> (i32, i32) {
    %c0_i32 = arith.constant 0 : i32
    %c0_i32_0 = arith.constant 0 : i32
    %c0_i32_1 = arith.constant 0 : i32
    return %c0_i32, %c0_i32_0 : i32, i32
  }
  func.func @transform_3(%arg0: i32, %arg1: i32) -> (i32, i32, i32) {
    %c0_i32 = arith.constant 0 : i32
    %c0_i32_0 = arith.constant 0 : i32
    return %arg0, %c0_i32, %arg1 : i32, i32, i32
  }
}

</mosaic_0001>

<bundles_post_ra>
// kernel: _lambda_.1
= control target key start
LH: loop header
LB: loop body
LE: loop exit
PB: predicated region body
PF: predicated region fallthrough
CT: control target
= control target key end

     0   :  { %s5837_s12 = smov 0   ;;  %s5839_s13 = smov 0   ;;  %s7361_s0 = inlined_call_operand.vmem [shape: f32[2,440,4], index: 0, kind: input, shape index: {}]   ;;  %s7362_s1 = inlined_call_operand.vmem [shape: f32[8,36], index: 1, kind: input, shape index: {}]   ;;  %s7363_s2 = inlined_call_operand.vmem [shape: f32[8,1], index: 2, kind: input, shape index: {}]   ;;  %s7364_s3 = inlined_call_operand.vmem [shape: f32[2,8,384], index: 3, kind: output, shape index: {}]  }
   0x1   :  { %s5841_s14 = smov 0  }
   0x2 LB: > { %s25_s15 = sadd.s32 1, %s5799_s13  ;;  %p3393_p0 = scmp.ge.s32.totalorder %s5803_s14, 1  ;;  %s5803_s14 = sphi %s5841_s14, %s13_s14   ;;  %s5799_s13 = sphi %s5839_s13, %s7599_s13   ;;  %s5795_s12 = sphi %s5837_s12, %s7598_s12  }
   0x3   : > { %p27_p1 = scmp.ge.s32.totalorder %s25_s15, 2  ;;  %p151_p2 = scmp.lt.s32.totalorder %s5803_s14, 3 }
   0x5   : > { %s7601_s15 = smov (%p27_p1, %s25_s15), 0  ;;  %p152_p3 = pnand %p3393_p0, %p151_p2 }
   0x7   : > { %155 = sbr.rel (%p152_p3) target bundleno = 861 (0x35d), region = 32 }
   0xe   : > { %v5858_v0 = vld [vmem:[%s7362_s1] sm:$0xff]  ;;  %p179_p4 = scmp.lt.s32.totalorder %s5795_s12, 1  ;;  %s5805_s18 = smov 124   ;;  %v7369_v1 = vmov 0.0|0.0   ;;  %vm5807_vm0 = vmmov 0   ;;  %v7365_v2 = vmov 0.0  }
   0xf   : > { %296 = vrot.lane.b32.xlu0 %v5858_v0, %s5805_s18  ;;  %5054 = vmatprep.subr.bf16.mxu1 %v7369_v1  ;;  %vm298_vm1 = vcmask 31744   ;;  %s5809_s20 = smov 120   ;;  %s5810_s24 = smov 116  }
  0x10   : > { %s7603_s12 = smov (!%p179_p4, %s5795_s12), 1  ;;  %4723 = vmatprep.mubr.msk.f32.mxu1 %vm5807_vm0, %v7365_v2  ;;  %vm5875_vm2 = vmpackc.low %vm298_vm1, %vm298_vm1  ;;  %1265 = vrot.lane.b32.xlu1 %v5858_v0, %s5810_s24  ;;  %s5811_s25 = smov 112  }
  0x11   : > { %s5742_s19 = smul.u32 440, %s7603_s12  ;;  %s5812_s26 = smov 108  }
  0x12   : > { %s5813_s27 = smov 104   ;;  %s5814_s28 = smov 100  }
  0x13   : > { %923 = vrot.lane.b32.xlu0 %v5858_v0, %s5809_s20  ;;  %s5871_s23 = scalar_lea.vmem %s7361_s0, %s5742_s19  ;;  %s5815_s29 = smov 96  }
  0x14   : > { %v3412_v4 = vld [vmem:[%s5871_s23 + $0x81] sm:$0xff]  ;;  %v3413_v5 = vld [vmem:[%s5871_s23 + $0x89] sm:$0xff]  ;;  %v3414_v13 = vld [vmem:[%s5871_s23 + $0x91] sm:$0xff]  ;;  %1607 = vrot.lane.b32.xlu1 %v5858_v0, %s5811_s25  ;;  %s5743_s5 = smul.u32 24, %s7603_s12 }
  0x15   : > { %v3428_v6 = vld [vmem:[%s5871_s23 + $0x101] sm:$0xff]  ;;  %v5006_v7 = vpack.c.bf16 %v3413_v5, %v3412_v4  ;;  %v3429_v8 = vld [vmem:[%s5871_s23 + $0x109] sm:$0xff]  ;;  %v5887_v14 = vld [vmem:[%s5871_s23 + $0x99] sm:$0xff] }
  0x16   : > { %v3396_v9 = vld [vmem:[%s5871_s23 + $0x1] sm:$0xff]  ;;  %v3397_v10 = vld [vmem:[%s5871_s23 + $0x9] sm:$0xff]  ;;  %v5055_v11 = vpack.c.bf16 %v3429_v8, %v3428_v6  ;;  %v5012_v15 = vpack.c.bf16 %v5887_v14, %v3414_v13  ;;  %v3430_v16 = vld [vmem:[%s5871_s23 + $0x111] sm:$0xff]  ;;  %s192_s8 = scalar_lea.vmem %s7364_s3, %s5743_s5 }
  0x17   : > { %v5009_v12 = vpack.c.bf16 %v3397_v10, %v3396_v9  ;;  %5008 = vmatprep.subr.msk.bf16.mxu0 %vm5875_vm2, %v5006_v7  ;;  %v5901_v17 = vld [vmem:[%s5871_s23 + $0x119] sm:$0xff]  ;;  %v3398_v18 = vld [vmem:[%s5871_s23 + $0x11] sm:$0xff]  ;;  %v5908_v20 = vld [vmem:[%s5871_s23 + $0xa1] sm:$0xff]  ;;  %1949 = vrot.lane.b32.xlu0 %v5858_v0, %s5812_s26 }
  0x18   : > { %5057 = vmatpush3.bf16.xpose.msk.msra.mxu1 %vm5875_vm2, %v5055_v11  ;;  %v5905_v19 = vld [vmem:[%s5871_s23 + $0x19] sm:$0xff]  ;;  %v5911_v21 = vld [vmem:[%s5871_s23 + $0xa9] sm:$0xff]  ;;  %v5059_v22 = vpack.c.bf16 %v5901_v17, %v3430_v16  ;;  %v5922_v25 = vld [vmem:[%s5871_s23 + $0x121] sm:$0xff]  ;;  %2291 = vrot.lane.b32.xlu1 %v5858_v0, %s5813_s27 }
  0x19   : > { %5011 = vmatpush3.bf16.xpose.msk.msra.mxu0 %vm5875_vm2, %v5009_v12  ;;  %5058 = vmatprep.subr.bf16.mxu1 %v7369_v1  ;;  %7446 = vst [vmem:[#allocation2_spill] sm:$0xff] %v5905_v19  ;;  %7447 = vst [vmem:[#allocation3_spill] sm:$0xff] %v5911_v21  ;;  %v5015_v23 = vpack.c.bf16 %v5905_v19, %v3398_v18  ;;  %v5018_v24 = vpack.c.bf16 %v5911_v21, %v5908_v20  ;;  %v5928_v26 = vld [vmem:[%s5871_s23 + $0x129] sm:$0xff]  ;;  %v5931_v27 = vld [vmem:[%s5871_s23 + $0x21] sm:$0xff] }
  0x1a   : > { %5014 = vmatprep.subr.msk.bf16.mxu0 %vm5875_vm2, %v5012_v15  ;;  %7448 = vst [vmem:[#allocation4_spill] sm:$0xff] %v5922_v25  ;;  %7449 = vst [vmem:[#allocation5_spill] sm:$0xff] %v5928_v26  ;;  %v5934_v28 = vld [vmem:[%s5871_s23 + $0x29] sm:$0xff]  ;;  %v5937_v29 = vld [vmem:[%s5871_s23 + $0xb1] sm:$0xff]  ;;  %v5063_v31 = vpack.c.bf16 %v5928_v26, %v5922_v25 }
  0x1b   : > { %7450 = vst [vmem:[#allocation6_spill] sm:$0xff] %v5931_v27  ;;  %7451 = vst [vmem:[#allocation7_spill] sm:$0xff] %v5934_v28  ;;  %v5940_v30 = vld [vmem:[%s5871_s23 + $0xb9] sm:$0xff]  ;;  %v5021_v32 = vpack.c.bf16 %v5934_v28, %v5931_v27  ;;  %v5953_v34 = vld [vmem:[%s5871_s23 + $0x131] sm:$0xff]  ;;  %2633 = vrot.lane.b32.xlu0 %v5858_v0, %s5814_s28 }
  0x1c   : > { %7452 = vst [vmem:[#allocation8_spill] sm:$0xff] %v5937_v29  ;;  %7453 = vst [vmem:[#allocation9_spill] sm:$0xff] %v5940_v30  ;;  %v5024_v33 = vpack.c.bf16 %v5940_v30, %v5937_v29  ;;  %v5959_v35 = vld [vmem:[%s5871_s23 + $0x139] sm:$0xff]  ;;  %v5962_v36 = vld [vmem:[%s5871_s23 + $0x31] sm:$0xff]  ;;  %2975 = vrot.lane.b32.xlu1 %v5858_v0, %s5815_s29 }
  0x1d   : > { %7454 = vst [vmem:[#allocation10_spill] sm:$0xff] %v5953_v34  ;;  %7455 = vst [vmem:[#allocation11_spill] sm:$0xff] %v5959_v35  ;;  %v5965_v37 = vld [vmem:[%s5871_s23 + $0x39] sm:$0xff]  ;;  %v5968_v38 = vld [vmem:[%s5871_s23 + $0xc1] sm:$0xff]  ;;  %v5067_v40 = vpack.c.bf16 %v5959_v35, %v5953_v34 }
  0x1e   : > { %7456 = vst [vmem:[#allocation12_spill] sm:$0xff] %v5962_v36  ;;  %7457 = vst [vmem:[#allocation13_spill] sm:$0xff] %v5965_v37  ;;  %v5971_v39 = vld [vmem:[%s5871_s23 + $0xc9] sm:$0xff]  ;;  %v5027_v41 = vpack.c.bf16 %v5965_v37, %v5962_v36  ;;  %v5984_v43 = vld [vmem:[%s5871_s23 + $0x141] sm:$0xff] }
  0x1f   : > { %7458 = vst [vmem:[#allocation14_spill] sm:$0xff] %v5968_v38  ;;  %7459 = vst [vmem:[#allocation15_spill] sm:$0xff] %v5971_v39  ;;  %v5030_v42 = vpack.c.bf16 %v5971_v39, %v5968_v38  ;;  %v5990_v44 = vld [vmem:[%s5871_s23 + $0x149] sm:$0xff]  ;;  %v5993_v45 = vld [vmem:[%s5871_s23 + $0x41] sm:$0xff] }
  0x20   : > { %5061 = vmatpush3.bf16.xpose.msk.msra.mxu1 %vm5875_vm2, %v5059_v22  ;;  %7460 = vst [vmem:[#allocation16_spill] sm:$0xff] %v5984_v43  ;;  %7461 = vst [vmem:[#allocation17_spill] sm:$0xff] %v5990_v44  ;;  %v5996_v46 = vld [vmem:[%s5871_s23 + $0x49] sm:$0xff]  ;;  %v5999_v47 = vld [vmem:[%s5871_s23 + $0xd1] sm:$0xff]  ;;  %v5071_v49 = vpack.c.bf16 %v5990_v44, %v5984_v43 }
  0x21   : > { %5017 = vmatpush3.bf16.xpose.msk.msra.mxu0 %vm5875_vm2, %v5015_v23  ;;  %5062 = vmatprep.subr.bf16.mxu1 %v7369_v1  ;;  %7462 = vst [vmem:[#allocation18_spill] sm:$0xff] %v5993_v45  ;;  %7463 = vst [vmem:[#allocation19_spill] sm:$0xff] %v5996_v46  ;;  %v6002_v48 = vld [vmem:[%s5871_s23 + $0xd9] sm:$0xff]  ;;  %v5033_v50 = vpack.c.bf16 %v5996_v46, %v5993_v45  ;;  %v6015_v52 = vld [vmem:[%s5871_s23 + $0x151] sm:$0xff] }
  0x22   : > { %5020 = vmatprep.subr.msk.bf16.mxu0 %vm5875_vm2, %v5018_v24  ;;  %7464 = vst [vmem:[#allocation20_spill] sm:$0xff] %v5999_v47  ;;  %7465 = vst [vmem:[#allocation21_spill] sm:$0xff] %v6002_v48  ;;  %v5036_v51 = vpack.c.bf16 %v6002_v48, %v5999_v47  ;;  %v6021_v53 = vld [vmem:[%s5871_s23 + $0x159] sm:$0xff]  ;;  %v6024_v54 = vld [vmem:[%s5871_s23 + $0x51] sm:$0xff] }
  0x23   : > { %7466 = vst [vmem:[#allocation22_spill] sm:$0xff] %v6015_v52  ;;  %7467 = vst [vmem:[#allocation23_spill] sm:$0xff] %v6021_v53  ;;  %v6027_v55 = vld [vmem:[%s5871_s23 + $0x59] sm:$0xff]  ;;  %v6030_v56 = vld [vmem:[%s5871_s23 + $0xe1] sm:$0xff]  ;;  %v5075_v58 = vpack.c.bf16 %v6021_v53, %v6015_v52 }
  0x24   : > { %7468 = vst [vmem:[#allocation24_spill] sm:$0xff] %v6024_v54  ;;  %7469 = vst [vmem:[#allocation25_spill] sm:$0xff] %v6027_v55  ;;  %v6033_v57 = vld [vmem:[%s5871_s23 + $0xe9] sm:$0xff]  ;;  %v5039_v59 = vpack.c.bf16 %v6027_v55, %v6024_v54  ;;  %v6046_v61 = vld [vmem:[%s5871_s23 + $0x161] sm:$0xff] }
  0x25   : > { %7470 = vst [vmem:[#allocation26_spill] sm:$0xff] %v6030_v56  ;;  %7471 = vst [vmem:[#allocation27_spill] sm:$0xff] %v6033_v57  ;;  %v5042_v60 = vpack.c.bf16 %v6033_v57, %v6030_v56  ;;  %v6052_v62 = vld [vmem:[%s5871_s23 + $0x169] sm:$0xff]  ;;  %v6055_v63 = vld [vmem:[%s5871_s23 + $0x61] sm:$0xff] }
  0x26   : > { %7472 = vst [vmem:[#allocation28_spill] sm:$0xff] %v6046_v61  ;;  %7473 = vst [vmem:[#allocation29_spill] sm:$0xff] %v6052_v62  ;;  %v6058_v4 = vld [vmem:[%s5871_s23 + $0x69] sm:$0xff]  ;;  %v6061_v5 = vld [vmem:[%s5871_s23 + $0xf1] sm:$0xff]  ;;  %v5079_v7 = vpack.c.bf16 %v6052_v62, %v6046_v61 }
  0x27   : > { %7474 = vst [vmem:[#allocation30_spill] sm:$0xff] %v6055_v63  ;;  %7475 = vst [vmem:[#allocation31_spill] sm:$0xff] %v6058_v4  ;;  %v6064_v6 = vld [vmem:[%s5871_s23 + $0xf9] sm:$0xff]  ;;  %v5045_v8 = vpack.c.bf16 %v6058_v4, %v6055_v63  ;;  %v6077_v10 = vld [vmem:[%s5871_s23 + $0x171] sm:$0xff] }
  0x28   : > { %5065 = vmatpush3.bf16.xpose.msk.msra.mxu1 %vm5875_vm2, %v5063_v31  ;;  %7476 = vst [vmem:[#allocation32_spill] sm:$0xff] %v6061_v5  ;;  %7477 = vst [vmem:[#allocation33_spill] sm:$0xff] %v6064_v6  ;;  %v5048_v9 = vpack.c.bf16 %v6064_v6, %v6061_v5  ;;  %v6083_v11 = vld [vmem:[%s5871_s23 + $0x179] sm:$0xff]  ;;  %v6086_v12 = vld [vmem:[%s5871_s23 + $0x71] sm:$0xff] }
  0x29   : > { %5023 = vmatpush3.bf16.xpose.msk.msra.mxu0 %vm5875_vm2, %v5021_v32  ;;  %5066 = vmatprep.subr.bf16.mxu1 %v7369_v1  ;;  %7478 = vst [vmem:[#allocation34_spill] sm:$0xff] %v6077_v10  ;;  %7479 = vst [vmem:[#allocation35_spill] sm:$0xff] %v6083_v11  ;;  %v6089_v13 = vld [vmem:[%s5871_s23 + $0x79] sm:$0xff]  ;;  %v6095_v16 = vld [vmem:[%s5871_s23 + $0x88] sm:$0xff]  ;;  %v5083_v18 = vpack.c.bf16 %v6083_v11, %v6077_v10 }
  0x2a   : > { %5026 = vmatprep.subr.msk.bf16.mxu0 %vm5875_vm2, %v5024_v33  ;;  %7480 = vst [vmem:[#allocation36_spill] sm:$0xff] %v6086_v12  ;;  %7481 = vst [vmem:[#allocation37_spill] sm:$0xff] %v6089_v13  ;;  %v6092_v15 = vld [vmem:[%s5871_s23 + $0x80] sm:$0xff]  ;;  %v5051_v22 = vpack.c.bf16 %v6089_v13, %v6086_v12  ;;  %v6115_v31 = vld [vmem:[%s5871_s23 + $0x108] sm:$0xff] }
  0x2b   : > { %v5086_v23 = vpack.c.bf16 %v6095_v16, %v6092_v15  ;;  %v6112_v24 = vld [vmem:[%s5871_s23 + $0x100] sm:$0xff]  ;;  %v197_v33 = vld [vmem:[%s5871_s23 + $0x8] sm:$0xff]  ;;  %v6210_v13 = vld [vmem:[%s5871_s23 + $0x30] sm:$0xff] }
  0x2c   : > { %v196_v32 = vld [vmem:[%s5871_s23] sm:$0xff]  ;;  %v6236_v10 = vld [vmem:[%s5871_s23 + $0x148] sm:$0xff]  ;;  %v6247_v5 = vld [vmem:[%s5871_s23 + $0xd0] sm:$0xff] }
  0x2d   : > { %v6216_v11 = vld [vmem:[%s5871_s23 + $0xc0] sm:$0xff]  ;;  %v6267_v61 = vld [vmem:[%s5871_s23 + $0x158] sm:$0xff]  ;;  %v6272_v53 = vld [vmem:[%s5871_s23 + $0x50] sm:$0xff] }
  0x2e   : > { %v6233_v4 = vld [vmem:[%s5871_s23 + $0x140] sm:$0xff]  ;;  %v6298_v52 = vld [vmem:[%s5871_s23 + $0x168] sm:$0xff]  ;;  %v6309_v47 = vld [vmem:[%s5871_s23 + $0xf0] sm:$0xff] }
  0x2f   : > { %v6241_v62 = vld [vmem:[%s5871_s23 + $0x40] sm:$0xff]  ;;  %v5151_v57 = vpack.c.bf16 %v6236_v10, %v6233_v4  ;;  %v6329_v43 = vld [vmem:[%s5871_s23 + $0x178] sm:$0xff]  ;;  %v6334_v35 = vld [vmem:[%s5871_s23 + $0x70] sm:$0xff] }
  0x30   : > { %5069 = vmatpush3.bf16.xpose.msk.msra.mxu1 %vm5875_vm2, %v5067_v40  ;;  %v6120_v40 = vld [vmem:[%s5871_s23 + $0x90] sm:$0xff]  ;;  %v6278_v56 = vld [vmem:[%s5871_s23 + $0xe0] sm:$0xff] }
  0x31   : > { %5029 = vmatpush3.bf16.xpose.msk.msra.mxu0 %vm5875_vm2, %v5027_v41  ;;  %5070 = vmatprep.subr.bf16.mxu1 %v7369_v1  ;;  %v6123_v41 = vld [vmem:[%s5871_s23 + $0x98] sm:$0xff]  ;;  %v6303_v44 = vld [vmem:[%s5871_s23 + $0x60] sm:$0xff]  ;;  %v6360_v34 = vld [vmem:[%s5871_s23 + $0x10a] sm:$0xff] }
  0x32   : > { %5032 = vmatprep.subr.msk.bf16.mxu0 %vm5875_vm2, %v5030_v42  ;;  %v5135_v42 = vpack.c.bf16 %v6115_v31, %v6112_v24  ;;  %v6340_v38 = vld [vmem:[%s5871_s23 + $0x82] sm:$0xff]  ;;  %7486 = vst [vmem:[#allocation41_spill] sm:$0xff] %v6360_v34  ;;  %v6423_v25 = vld [vmem:[%s5871_s23 + $0x12a] sm:$0xff] }
  0x33   : > { %7483 = vst [vmem:[#allocation38_spill] sm:$0xff] %v6340_v38  ;;  %v3544_v26 = vld [vmem:[%s5871_s23 + $0x2] sm:$0xff]  ;;  %7496 = vst [vmem:[#allocation50_spill] sm:$0xff] %v6423_v25 }
  0x34   : > { %v6420_v19 = vld [vmem:[%s5871_s23 + $0x122] sm:$0xff] }
  0x35   : > { %7495 = vst [vmem:[#allocation49_spill] sm:$0xff] %v6420_v19 }
  0x38   : > { %5073 = vmatpush3.bf16.xpose.msk.msra.mxu1 %vm5875_vm2, %v5071_v49  ;;  %v5089_v49 = vpack.c.bf16 %v197_v33, %v196_v32  ;;  %v6170_v32 = vld [vmem:[%s5871_s23 + $0x120] sm:$0xff]  ;;  %v6173_v33 = vld [vmem:[%s5871_s23 + $0x128] sm:$0xff] }
  0x39   : > { %5035 = vmatpush3.bf16.xpose.msk.msra.mxu0 %vm5875_vm2, %v5033_v50  ;;  %5074 = vmatprep.subr.bf16.mxu1 %v7369_v1 }
  0x3a   : > { %5038 = vmatprep.subr.msk.bf16.mxu0 %vm5875_vm2, %v5036_v51  ;;  %v5092_v51 = vpack.c.bf16 %v6123_v41, %v6120_v40 }
  0x40   : > { %5077 = vmatpush3.bf16.xpose.msk.msra.mxu1 %vm5875_vm2, %v5075_v58  ;;  %v6138_v58 = vld [vmem:[%s5871_s23 + $0x110] sm:$0xff] }
  0x41   : > { %5041 = vmatpush3.bf16.xpose.msk.msra.mxu0 %vm5875_vm2, %v5039_v59  ;;  %5078 = vmatprep.subr.bf16.mxu1 %v7369_v1  ;;  %v6141_v59 = vld [vmem:[%s5871_s23 + $0x118] sm:$0xff] }
  0x42   : > { %5044 = vmatprep.subr.msk.bf16.mxu0 %vm5875_vm2, %v5042_v60  ;;  %v198_v60 = vld [vmem:[%s5871_s23 + $0x10] sm:$0xff] }
  0x48   : > { %5081 = vmatpush3.bf16.xpose.msk.msra.mxu1 %vm5875_vm2, %v5079_v7  ;;  %v6147_v7 = vld [vmem:[%s5871_s23 + $0x18] sm:$0xff] }
  0x49   : > { %5047 = vmatpush3.bf16.xpose.msk.msra.mxu0 %vm5875_vm2, %v5045_v8  ;;  %5082 = vmatprep.subr.bf16.mxu1 %v7369_v1  ;;  %v6152_v8 = vld [vmem:[%s5871_s23 + $0xa0] sm:$0xff] }
  0x4a   : > { %5050 = vmatprep.subr.msk.bf16.mxu0 %vm5875_vm2, %v5048_v9  ;;  %v6155_v9 = vld [vmem:[%s5871_s23 + $0xa8] sm:$0xff] }
  0x50   : > { %5085 = vmatpush3.bf16.xpose.msk.msra.mxu1 %vm5875_vm2, %v5083_v18  ;;  %v5139_v18 = vpack.c.bf16 %v6141_v59, %v6138_v58 }
  0x51   : > { %5053 = vmatpush3.bf16.xpose.msk.msra.mxu0 %vm5875_vm2, %v5051_v22  ;;  %5134 = vmatprep.subr.bf16.mxu1 %v7369_v1  ;;  %v5095_v22 = vpack.c.bf16 %v6147_v7, %v198_v60  ;;  %v5143_v60 = vpack.c.bf16 %v6173_v33, %v6170_v32 }
  0x52   : > { %5088 = vmatprep.subr.msk.bf16.mxu0 %vm5875_vm2, %v5086_v23  ;;  %v5098_v23 = vpack.c.bf16 %v6155_v9, %v6152_v8 }
  0x81   : > { %v297_v50 = vpop.permute.xlu0 %296 }
  0x82   : > { %4264 = vmatprep.mubr.msk.f32.mxu0 %vm298_vm1, %v297_v50  ;;  %4724 = vmatmul.mubr.msk.f32.vlgmr.msra.gmra.mrb[0].mxu1 %vm298_vm1, %v297_v50 }
  0x83   : > { %5137 = vmatpush3.bf16.xpose.msk.msra.mxu1 %vm5875_vm2, %v5135_v42  ;;  %4265 = vmatmul.mubr.msk.f32.vlgmr.msra.gmra.mrb[0].mxu0 %vm298_vm1, %v297_v50  ;;  %v6178_v42 = vld [vmem:[%s5871_s23 + $0x20] sm:$0xff]  ;;  %v6185_v50 = vld [vmem:[%s5871_s23 + $0xb0] sm:$0xff] }
  0x84   : > { %5091 = vmatpush3.bf16.xpose.msk.msra.mxu0 %vm5875_vm2, %v5089_v49  ;;  %5138 = vmatprep.subr.bf16.mxu1 %v7369_v1  ;;  %v6181_v49 = vld [vmem:[%s5871_s23 + $0x28] sm:$0xff] }
  0x85   : > { %5094 = vmatprep.subr.msk.bf16.mxu0 %vm5875_vm2, %v5092_v51  ;;  %4758 = vmatprep.mubr.msk.f32.mxu1 %vm5807_vm0, %v7365_v2  ;;  %v6188_v51 = vld [vmem:[%s5871_s23 + $0xb8] sm:$0xff] }
  0x86   : > { %4315 = vmatprep.mubr.msk.f32.mxu0 %vm298_vm1, %v5858_v0  ;;  %v6205_v2 = vld [vmem:[%s5871_s23 + $0x138] sm:$0xff] }
  0x8b   : > { %5141 = vmatpush3.bf16.xpose.msk.msra.mxu1 %vm5875_vm2, %v5139_v18  ;;  %v5101_v18 = vpack.c.bf16 %v6181_v49, %v6178_v42 }
  0x8c   : > { %5097 = vmatpush3.bf16.xpose.msk.msra.mxu0 %vm5875_vm2, %v5095_v22  ;;  %5142 = vmatprep.subr.bf16.mxu1 %v7369_v1  ;;  %v5104_v22 = vpack.c.bf16 %v6188_v51, %v6185_v50 }
  0x8d   : > { %5100 = vmatprep.subr.msk.bf16.mxu0 %vm5875_vm2, %v5098_v23  ;;  %v6202_v23 = vld [vmem:[%s5871_s23 + $0x130] sm:$0xff] }
  0x93   : > { %5145 = vmatpush3.bf16.xpose.msk.msra.mxu1 %vm5875_vm2, %v5143_v60  ;;  %v6213_v60 = vld [vmem:[%s5871_s23 + $0x38] sm:$0xff] }
  0x94   : > { %5103 = vmatpush3.bf16.xpose.msk.msra.mxu0 %vm5875_vm2, %v5101_v18  ;;  %5146 = vmatprep.subr.bf16.mxu1 %v7369_v1  ;;  %v6219_v18 = vld [vmem:[%s5871_s23 + $0xc8] sm:$0xff]  ;;  %v5147_v1 = vpack.c.bf16 %v6205_v2, %v6202_v23  ;;  %v5107_v6 = vpack.c.bf16 %v6213_v60, %v6210_v13 }
  0x95   : > { %5106 = vmatprep.subr.msk.bf16.mxu0 %vm5875_vm2, %v5104_v22  ;;  %v5110_v12 = vpack.c.bf16 %v6219_v18, %v6216_v11  ;;  %v7482_v22 = vmov 0.0|0.0  }
  0x9b   : > { %5149 = vmatpush3.bf16.xpose.msk.msra.mxu1 %vm5875_vm2, %v5147_v1  ;;  %v6244_v1 = vld [vmem:[%s5871_s23 + $0x48] sm:$0xff] }
  0x9c   : > { %5109 = vmatpush3.bf16.xpose.msk.msra.mxu0 %vm5875_vm2, %v5107_v6  ;;  %5150 = vmatprep.subr.bf16.mxu1 %v7482_v22  ;;  %v6250_v6 = vld [vmem:[%s5871_s23 + $0xd8] sm:$0xff]  ;;  %v5113_v63 = vpack.c.bf16 %v6244_v1, %v6241_v62 }
  0x9d   : > { %5112 = vmatprep.subr.msk.bf16.mxu0 %vm5875_vm2, %v5110_v12  ;;  %v5116_v55 = vpack.c.bf16 %v6250_v6, %v6247_v5  ;;  %v6264_v12 = vld [vmem:[%s5871_s23 + $0x150] sm:$0xff] }
  0x9e   : > { %v5155_v48 = vpack.c.bf16 %v6267_v61, %v6264_v12 }
  0xa3   : > { %5153 = vmatpush3.bf16.xpose.msk.msra.mxu1 %vm5875_vm2, %v5151_v57  ;;  %v6275_v57 = vld [vmem:[%s5871_s23 + $0x58] sm:$0xff] }
  0xa4   : > { %5115 = vmatpush3.bf16.xpose.msk.msra.mxu0 %vm5875_vm2, %v5113_v63  ;;  %5154 = vmatprep.subr.bf16.mxu1 %v7482_v22  ;;  %v6281_v63 = vld [vmem:[%s5871_s23 + $0xe8] sm:$0xff]  ;;  %v5119_v54 = vpack.c.bf16 %v6275_v57, %v6272_v53 }
  0xa5   : > { %5118 = vmatprep.subr.msk.bf16.mxu0 %vm5875_vm2, %v5116_v55  ;;  %v5122_v46 = vpack.c.bf16 %v6281_v63, %v6278_v56  ;;  %v6295_v55 = vld [vmem:[%s5871_s23 + $0x160] sm:$0xff] }
  0xa6   : > { %v5159_v39 = vpack.c.bf16 %v6298_v52, %v6295_v55 }
  0xab   : > { %5157 = vmatpush3.bf16.xpose.msk.msra.mxu1 %vm5875_vm2, %v5155_v48  ;;  %v6306_v48 = vld [vmem:[%s5871_s23 + $0x68] sm:$0xff] }
  0xac   : > { %5121 = vmatpush3.bf16.xpose.msk.msra.mxu0 %vm5875_vm2, %v5119_v54  ;;  %5158 = vmatprep.subr.bf16.mxu1 %v7482_v22  ;;  %v6312_v54 = vld [vmem:[%s5871_s23 + $0xf8] sm:$0xff]  ;;  %v5125_v45 = vpack.c.bf16 %v6306_v48, %v6303_v44 }
  0xad   : > { %5124 = vmatprep.subr.msk.bf16.mxu0 %vm5875_vm2, %v5122_v46  ;;  %v5128_v37 = vpack.c.bf16 %v6312_v54, %v6309_v47  ;;  %v6326_v46 = vld [vmem:[%s5871_s23 + $0x170] sm:$0xff] }
  0xae   : > { %v5163_v30 = vpack.c.bf16 %v6329_v43, %v6326_v46 }
  0xb3   : > { %5161 = vmatpush3.bf16.xpose.msk.msra.mxu1 %vm5875_vm2, %v5159_v39  ;;  %v6337_v39 = vld [vmem:[%s5871_s23 + $0x78] sm:$0xff] }
  0xb4   : > { %5127 = vmatpush3.bf16.xpose.msk.msra.mxu0 %vm5875_vm2, %v5125_v45  ;;  %5162 = vmatprep.subr.bf16.mxu1 %v7482_v22  ;;  %v6343_v45 = vld [vmem:[%s5871_s23 + $0x8a] sm:$0xff]  ;;  %v5131_v36 = vpack.c.bf16 %v6337_v39, %v6334_v35 }
  0xb5   : > { %5130 = vmatprep.subr.msk.bf16.mxu0 %vm5875_vm2, %v5128_v37  ;;  %7484 = vst [vmem:[#allocation39_spill] sm:$0xff] %v6343_v45  ;;  %v5166_v28 = vpack.c.bf16 %v6343_v45, %v6340_v38  ;;  %v6357_v37 = vld [vmem:[%s5871_s23 + $0x102] sm:$0xff]  ;;  %v3545_v45 = vld [vmem:[%s5871_s23 + $0xa] sm:$0xff]  ;;  %v6367_v38 = vld [vmem:[%s5871_s23 + $0x92] sm:$0xff] }
  0xb6   : > { %7485 = vst [vmem:[#allocation40_spill] sm:$0xff] %v6357_v37  ;;  %7487 = vst [vmem:[#allocation42_spill] sm:$0xff] %v6367_v38  ;;  %v5169_v29 = vpack.c.bf16 %v3545_v45, %v3544_v26  ;;  %v6388_v26 = vld [vmem:[%s5871_s23 + $0x112] sm:$0xff]  ;;  %v6391_v45 = vld [vmem:[%s5871_s23 + $0x11a] sm:$0xff] }
  0xb7   : > { %7489 = vst [vmem:[#allocation44_spill] sm:$0xff] %v6388_v26  ;;  %7490 = vst [vmem:[#allocation45_spill] sm:$0xff] %v6391_v45 }
  0xbb   : > { %5165 = vmatpush3.bf16.xpose.msk.msra.mxu1 %vm5875_vm2, %v5163_v30  ;;  %v6370_v30 = vld [vmem:[%s5871_s23 + $0x9a] sm:$0xff] }
  0xbc   : > { %5133 = vmatpush3.bf16.xpose.msk.msra.mxu0 %vm5875_vm2, %v5131_v36  ;;  %5214 = vmatprep.subr.bf16.mxu1 %v7482_v22  ;;  %7488 = vst [vmem:[#allocation43_spill] sm:$0xff] %v6370_v30  ;;  %v5215_v36 = vpack.c.bf16 %v6360_v34, %v6357_v37  ;;  %v5172_v21 = vpack.c.bf16 %v6370_v30, %v6367_v38  ;;  %v6397_v38 = vld [vmem:[%s5871_s23 + $0x1a] sm:$0xff]  ;;  %v7492_v34 = vmov 0.0   ;;  %v6405_v37 = vld [vmem:[%s5871_s23 + $0xaa] sm:$0xff] }
  0xbd   : > { %5168 = vmatprep.subr.msk.bf16.mxu0 %vm5875_vm2, %v5166_v28  ;;  %v6382_v28 = vpop.permute.xlu0 %923  ;;  %7491 = vst [vmem:[#allocation46_spill] sm:$0xff] %v6397_v38  ;;  %7494 = vst [vmem:[#allocation48_spill] sm:$0xff] %v6405_v37 }
  0xc2   : > { %4759 = vmatmul.mubr.msk.f32.vlgmr.msra.gmra.mrb[2].mxu1 %vm298_vm1, %v5858_v0 }
  0xc3   : > { %5217 = vmatpush3.bf16.xpose.msk.msra.mxu1 %vm5875_vm2, %v5215_v36  ;;  %4316 = vmatmul.mubr.msk.f32.vlgmr.msra.gmra.mrb[0].mxu0 %vm298_vm1, %v5858_v0  ;;  %v3546_v36 = vld [vmem:[%s5871_s23 + $0x12] sm:$0xff] }
  0xc4   : > { %5171 = vmatpush3.bf16.xpose.msk.msra.mxu0 %vm5875_vm2, %v5169_v29  ;;  %5218 = vmatprep.subr.bf16.mxu1 %v7482_v22  ;;  %v6402_v29 = vld [vmem:[%s5871_s23 + $0xa2] sm:$0xff]  ;;  %v5175_v30 = vpack.c.bf16 %v6397_v38, %v3546_v36 }
  0xc5   : > { %5174 = vmatprep.subr.msk.bf16.mxu0 %vm5875_vm2, %v5172_v21  ;;  %4793 = vmatprep.mubr.msk.f32.mxu1 %vm5807_vm0, %v7492_v34  ;;  %7493 = vst [vmem:[#allocation47_spill] sm:$0xff] %v6402_v29  ;;  %v5219_v21 = vpack.c.bf16 %v6391_v45, %v6388_v26  ;;  %v5178_v27 = vpack.c.bf16 %v6405_v37, %v6402_v29  ;;  %v6428_v36 = vld [vmem:[%s5871_s23 + $0x22] sm:$0xff]  ;;  %v6431_v26 = vld [vmem:[%s5871_s23 + $0x2a] sm:$0xff]  ;;  %v6452_v45 = vld [vmem:[%s5871_s23 + $0x132] sm:$0xff] }
  0xc6   : > { %4366 = vmatprep.mubr.msk.f32.mxu0 %vm298_vm1, %v6382_v28  ;;  %7497 = vst [vmem:[#allocation51_spill] sm:$0xff] %v6428_v36  ;;  %7498 = vst [vmem:[#allocation52_spill] sm:$0xff] %v6431_v26  ;;  %v5223_v37 = vpack.c.bf16 %v6423_v25, %v6420_v19  ;;  %v6455_v25 = vld [vmem:[%s5871_s23 + $0x13a] sm:$0xff] }
  0xc7   : > { %7501 = vst [vmem:[#allocation55_spill] sm:$0xff] %v6452_v45  ;;  %7502 = vst [vmem:[#allocation56_spill] sm:$0xff] %v6455_v25  ;;  %v6579_v29 = vld [vmem:[%s5871_s23 + $0x17a] sm:$0xff] }
  0xcb   : > { %5221 = vmatpush3.bf16.xpose.msk.msra.mxu1 %vm5875_vm2, %v5219_v21  ;;  %v6438_v21 = vld [vmem:[%s5871_s23 + $0xba] sm:$0xff] }
  0xcc   : > { %5177 = vmatpush3.bf16.xpose.msk.msra.mxu0 %vm5875_vm2, %v5175_v30  ;;  %5222 = vmatprep.subr.bf16.mxu1 %v7482_v22  ;;  %v6435_v30 = vld [vmem:[%s5871_s23 + $0xb2] sm:$0xff]  ;;  %7500 = vst [vmem:[#allocation54_spill] sm:$0xff] %v6438_v21 }
  0xcd   : > { %5180 = vmatprep.subr.msk.bf16.mxu0 %vm5875_vm2, %v5178_v27  ;;  %7499 = vst [vmem:[#allocation53_spill] sm:$0xff] %v6435_v30  ;;  %v5181_v27 = vpack.c.bf16 %v6431_v26, %v6428_v36  ;;  %v5184_v38 = vpack.c.bf16 %v6438_v21, %v6435_v30  ;;  %v6460_v21 = vld [vmem:[%s5871_s23 + $0x32] sm:$0xff]  ;;  %v6466_v26 = vld [vmem:[%s5871_s23 + $0xc2] sm:$0xff]  ;;  %v5227_v30 = vpack.c.bf16 %v6455_v25, %v6452_v45  ;;  %v6486_v25 = vld [vmem:[%s5871_s23 + $0x14a] sm:$0xff] }
  0xce   : > { %7503 = vst [vmem:[#allocation57_spill] sm:$0xff] %v6460_v21  ;;  %7505 = vst [vmem:[#allocation59_spill] sm:$0xff] %v6466_v26 }
  0xcf   : > { %7508 = vst [vmem:[#allocation62_spill] sm:$0xff] %v6486_v25 }
  0xd3   : > { %5225 = vmatpush3.bf16.xpose.msk.msra.mxu1 %vm5875_vm2, %v5223_v37  ;;  %v6463_v37 = vld [vmem:[%s5871_s23 + $0x3a] sm:$0xff] }
  0xd4   : > { %5183 = vmatpush3.bf16.xpose.msk.msra.mxu0 %vm5875_vm2, %v5181_v27  ;;  %5226 = vmatprep.subr.bf16.mxu1 %v7482_v22  ;;  %7504 = vst [vmem:[#allocation58_spill] sm:$0xff] %v6463_v37  ;;  %v6469_v27 = vld [vmem:[%s5871_s23 + $0xca] sm:$0xff]  ;;  %v5187_v36 = vpack.c.bf16 %v6463_v37, %v6460_v21  ;;  %v6497_v37 = vld [vmem:[%s5871_s23 + $0xd2] sm:$0xff] }
  0xd5   : > { %5186 = vmatprep.subr.msk.bf16.mxu0 %vm5875_vm2, %v5184_v38  ;;  %7506 = vst [vmem:[#allocation60_spill] sm:$0xff] %v6469_v27  ;;  %v5190_v19 = vpack.c.bf16 %v6469_v27, %v6466_v26  ;;  %v6483_v38 = vld [vmem:[%s5871_s23 + $0x142] sm:$0xff]  ;;  %7511 = vst [vmem:[#allocation65_spill] sm:$0xff] %v6497_v37 }
  0xd6   : > { %7507 = vst [vmem:[#allocation61_spill] sm:$0xff] %v6483_v38  ;;  %v6491_v27 = vld [vmem:[%s5871_s23 + $0x42] sm:$0xff]  ;;  %v5231_v26 = vpack.c.bf16 %v6486_v25, %v6483_v38  ;;  %v6517_v25 = vld [vmem:[%s5871_s23 + $0x15a] sm:$0xff] }
  0xd7   : > { %7509 = vst [vmem:[#allocation63_spill] sm:$0xff] %v6491_v27  ;;  %7514 = vst [vmem:[#allocation68_spill] sm:$0xff] %v6517_v25 }
  0xdb   : > { %5229 = vmatpush3.bf16.xpose.msk.msra.mxu1 %vm5875_vm2, %v5227_v30  ;;  %v6494_v30 = vld [vmem:[%s5871_s23 + $0x4a] sm:$0xff] }
  0xdc   : > { %5189 = vmatpush3.bf16.xpose.msk.msra.mxu0 %vm5875_vm2, %v5187_v36  ;;  %5230 = vmatprep.subr.bf16.mxu1 %v7482_v22  ;;  %7510 = vst [vmem:[#allocation64_spill] sm:$0xff] %v6494_v30  ;;  %v6500_v36 = vld [vmem:[%s5871_s23 + $0xda] sm:$0xff]  ;;  %v5193_v21 = vpack.c.bf16 %v6494_v30, %v6491_v27  ;;  %v6528_v30 = vld [vmem:[%s5871_s23 + $0xe2] sm:$0xff] }
  0xdd   : > { %5192 = vmatprep.subr.msk.bf16.mxu0 %vm5875_vm2, %v5190_v19  ;;  %7512 = vst [vmem:[#allocation66_spill] sm:$0xff] %v6500_v36  ;;  %v5196_v45 = vpack.c.bf16 %v6500_v36, %v6497_v37  ;;  %v6514_v19 = vld [vmem:[%s5871_s23 + $0x152] sm:$0xff]  ;;  %7517 = vst [vmem:[#allocation71_spill] sm:$0xff] %v6528_v30 }
  0xde   : > { %7513 = vst [vmem:[#allocation67_spill] sm:$0xff] %v6514_v19  ;;  %v6522_v36 = vld [vmem:[%s5871_s23 + $0x52] sm:$0xff]  ;;  %v5235_v37 = vpack.c.bf16 %v6517_v25, %v6514_v19  ;;  %v6548_v25 = vld [vmem:[%s5871_s23 + $0x16a] sm:$0xff] }
  0xdf   : > { %7515 = vst [vmem:[#allocation69_spill] sm:$0xff] %v6522_v36  ;;  %7519 = vst [vmem:[#allocation73_spill] sm:$0xff] %v6548_v25 }
  0xe3   : > { %5233 = vmatpush3.bf16.xpose.msk.msra.mxu1 %vm5875_vm2, %v5231_v26  ;;  %v6525_v26 = vld [vmem:[%s5871_s23 + $0x5a] sm:$0xff] }
  0xe4   : > { %5195 = vmatpush3.bf16.xpose.msk.msra.mxu0 %vm5875_vm2, %v5193_v21  ;;  %5234 = vmatprep.subr.bf16.mxu1 %v7482_v22  ;;  %7516 = vst [vmem:[#allocation70_spill] sm:$0xff] %v6525_v26  ;;  %v6531_v21 = vld [vmem:[%s5871_s23 + $0xea] sm:$0xff]  ;;  %v5199_v27 = vpack.c.bf16 %v6525_v26, %v6522_v36 }
  0xe5   : > { %5198 = vmatprep.subr.msk.bf16.mxu0 %vm5875_vm2, %v5196_v45  ;;  %7518 = vst [vmem:[#allocation72_spill] sm:$0xff] %v6531_v21  ;;  %v5202_v38 = vpack.c.bf16 %v6531_v21, %v6528_v30  ;;  %v6545_v45 = vld [vmem:[%s5871_s23 + $0x162] sm:$0xff]  ;;  %v6556_v26 = vld [vmem:[%s5871_s23 + $0x6a] sm:$0xff]  ;;  %v6562_v30 = vld [vmem:[%s5871_s23 + $0xfa] sm:$0xff] }
  0xe6   : > { %v6553_v21 = vld [vmem:[%s5871_s23 + $0x62] sm:$0xff]  ;;  %7520 = vst [vmem:[#allocation74_spill] sm:$0xff] %v6556_v26  ;;  %7521 = vst [vmem:[#allocation75_spill] sm:$0xff] %v6562_v30 }
  0xe7   : > { %v5205_v36 = vpack.c.bf16 %v6556_v26, %v6553_v21  ;;  %v6587_v26 = vld [vmem:[%s5871_s23 + $0x7a] sm:$0xff] }
  0xe8   : > { %7522 = vst [vmem:[#allocation76_spill] sm:$0xff] %v6587_v26 }
  0xeb   : > { %5237 = vmatpush3.bf16.xpose.msk.msra.mxu1 %vm5875_vm2, %v5235_v37  ;;  %v6559_v37 = vld [vmem:[%s5871_s23 + $0xf2] sm:$0xff] }
  0xec   : > { %5201 = vmatpush3.bf16.xpose.msk.msra.mxu0 %vm5875_vm2, %v5199_v27  ;;  %5238 = vmatprep.subr.bf16.mxu1 %v7482_v22  ;;  %v5239_v27 = vpack.c.bf16 %v6548_v25, %v6545_v45  ;;  %v5208_v19 = vpack.c.bf16 %v6562_v30, %v6559_v37  ;;  %v6584_v25 = vld [vmem:[%s5871_s23 + $0x72] sm:$0xff] }
  0xed   : > { %5204 = vmatprep.subr.msk.bf16.mxu0 %vm5875_vm2, %v5202_v38  ;;  %v6576_v38 = vld [vmem:[%s5871_s23 + $0x172] sm:$0xff] }
  0xee   : > { %v5243_v30 = vpack.c.bf16 %v6579_v29, %v6576_v38 }
  0xf3   : > { %5241 = vmatpush3.bf16.xpose.msk.msra.mxu1 %vm5875_vm2, %v5239_v27  ;;  %v5211_v27 = vpack.c.bf16 %v6587_v26, %v6584_v25  ;;  %v5249_v26 = vpack.c.bf16 %v6178_v42, %v6147_v7  ;;  %v5255_v7 = vpack.c.bf16 %v6210_v13, %v6181_v49  ;;  %v5303_v13 = vpack.c.bf16 %v6233_v4, %v6205_v2  ;;  %v6709_v42 = vld [vmem:[%s5871_s23 + $0x190] sm:$0xff] }
  0xf4   : > { %5207 = vmatpush3.bf16.xpose.msk.msra.mxu0 %vm5875_vm2, %v5205_v36  ;;  %5242 = vmatprep.subr.bf16.mxu1 %v7482_v22  ;;  %v5246_v36 = vpack.c.bf16 %v6152_v8, %v6123_v41  ;;  %v5252_v41 = vpack.c.bf16 %v6185_v50, %v6155_v9  ;;  %v6614_v8 = vpop.permute.xlu1 %1265  ;;  %v5258_v9 = vpack.c.bf16 %v6216_v11, %v6188_v51  ;;  %v7524_v50 = vld [vmem:[#allocation2_spill] sm:$0xff] }
  0xf5   : > { %5210 = vmatprep.subr.msk.bf16.mxu0 %vm5875_vm2, %v5208_v19  ;;  %v5295_v19 = vpack.c.bf16 %v6170_v32, %v6141_v59  ;;  %v5299_v59 = vpack.c.bf16 %v6202_v23, %v6173_v33  ;;  %v5261_v11 = vpack.c.bf16 %v6241_v62, %v6213_v60  ;;  %v5264_v32 = vpack.c.bf16 %v6247_v5, %v6219_v18  ;;  %v6706_v33 = vld [vmem:[%s5871_s23 + $0x188] sm:$0xff]  ;;  %v7525_v51 = vld [vmem:[#allocation6_spill] sm:$0xff]  ;;  %v7527_v23 = vld [vmem:[#allocation8_spill] sm:$0xff] }
  0xf6   : > { %v5307_v2 = vpack.c.bf16 %v6264_v12, %v6236_v10  ;;  %v5267_v62 = vpack.c.bf16 %v6272_v53, %v6244_v1  ;;  %v5270_v4 = vpack.c.bf16 %v6278_v56, %v6250_v6  ;;  %v5311_v5 = vpack.c.bf16 %v6295_v55, %v6267_v61  ;;  %v6690_v10 = vld [vmem:[%s5871_s23 + $0x180] sm:$0xff]  ;;  %v7530_v1 = vld [vmem:[#allocation7_spill] sm:$0xff]  ;;  %v7531_v6 = vld [vmem:[#allocation12_spill] sm:$0xff] }
  0xf7   : > { %v5273_v53 = vpack.c.bf16 %v6303_v44, %v6275_v57  ;;  %v5276_v56 = vpack.c.bf16 %v6309_v47, %v6281_v63  ;;  %v5315_v61 = vpack.c.bf16 %v6326_v46, %v6298_v52  ;;  %v5279_v44 = vpack.c.bf16 %v6334_v35, %v6306_v48  ;;  %v7529_v60 = vld [vmem:[#allocation10_spill] sm:$0xff]  ;;  %v7532_v57 = vld [vmem:[#allocation9_spill] sm:$0xff]  ;;  %v7534_v48 = vld [vmem:[#allocation11_spill] sm:$0xff] }
  0xf8   : > { %v5282_v47 = vpack.c.bf16 %v6112_v24, %v6312_v54  ;;  %v5319_v52 = vpack.c.bf16 %v6690_v10, %v6329_v43  ;;  %v5285_v35 = vpack.c.bf16 %v6092_v15, %v6337_v39  ;;  %v5288_v24 = vpack.c.bf16 %v6138_v58, %v6115_v31  ;;  %v7523_v58 = vld [vmem:[#allocation4_spill] sm:$0xff]  ;;  %v7533_v63 = vld [vmem:[#allocation14_spill] sm:$0xff]  ;;  %v7536_v39 = vld [vmem:[#allocation13_spill] sm:$0xff] }
  0xf9   : > { %v5323_v43 = vpack.c.bf16 %v6709_v42, %v6706_v33  ;;  %v5291_v15 = vpack.c.bf16 %v6120_v40, %v6095_v16  ;;  %v5326_v31 = vpack.c.bf16 %v5908_v20, %v5887_v14  ;;  %v5375_v49 = vpack.c.bf16 %v7523_v58, %v5901_v17  ;;  %v7526_v40 = vld [vmem:[#allocation3_spill] sm:$0xff]  ;;  %v6738_v20 = vpop.permute.xlu1 %1607  ;;  %v7528_v17 = vld [vmem:[#allocation5_spill] sm:$0xff]  ;;  %v7535_v54 = vld [vmem:[#allocation16_spill] sm:$0xff] }
  0xfa   : > { %v5329_v16 = vpack.c.bf16 %v7525_v51, %v7524_v50  ;;  %v5332_v14 = vpack.c.bf16 %v7527_v23, %v7526_v40  ;;  %v5379_v18 = vpack.c.bf16 %v7529_v60, %v7528_v17  ;;  %v5335_v12 = vpack.c.bf16 %v7531_v6, %v7530_v1  ;;  %v7554_v58 = vld [vmem:[#allocation31_spill] sm:$0xff]  ;;  %v7556_v51 = vld [vmem:[#allocation33_spill] sm:$0xff] }
  0xfb   : > { %5245 = vmatpush3.bf16.xpose.msk.msra.mxu1 %vm5875_vm2, %v5243_v30  ;;  %v5338_v55 = vpack.c.bf16 %v7533_v63, %v7532_v57  ;;  %v5383_v46 = vpack.c.bf16 %v7535_v54, %v7534_v48  ;;  %v6819_v40 = vld [vmem:[%s5871_s23 + $0x181] sm:$0xff]  ;;  %v6830_v17 = vld [vmem:[%s5871_s23 + $0x111] sm:$0xff]  ;;  %v6844_v57 = vld [vmem:[%s5871_s23 + $0x189] sm:$0xff] }
  0xfc   : > { %5213 = vmatpush3.bf16.xpose.msk.msra.mxu0 %vm5875_vm2, %v5211_v27  ;;  %5294 = vmatprep.subr.bf16.mxu1 %v7482_v22  ;;  %v7539_v27 = vld [vmem:[#allocation20_spill] sm:$0xff]  ;;  %v6824_v23 = vld [vmem:[%s5871_s23 + $0x81] sm:$0xff]  ;;  %v7558_v1 = vld [vmem:[#allocation37_spill] sm:$0xff] }
  0xfd   : > { %5248 = vmatprep.subr.msk.bf16.mxu0 %vm5875_vm2, %v5246_v36  ;;  %v7557_v60 = vld [vmem:[#allocation35_spill] sm:$0xff]  ;;  %v5365_v6 = vpack.c.bf16 %v6824_v23, %v7558_v1  ;;  %v6847_v63 = vld [vmem:[%s5871_s23 + $0x191] sm:$0xff] }
  0xfe   : > { %v6855_v48 = vld [vmem:[%s5871_s23 + $0x91] sm:$0xff]  ;;  %v5403_v54 = vpack.c.bf16 %v6847_v63, %v6844_v57 }
  0xff   : > { %v7581_v1 = vld [vmem:[#allocation64_spill] sm:$0xff] }
 0x102   : > { %4794 = vmatmul.mubr.msk.f32.vlgmr.msra.gmra.mrb[4].mxu1 %vm298_vm1, %v6382_v28 }
 0x103   : > { %4367 = vmatmul.mubr.msk.f32.vlgmr.msra.gmra.mrb[0].mxu0 %vm298_vm1, %v6382_v28  ;;  %5297 = vmatpush3.bf16.xpose.msk.msra.mxu1 %vm5875_vm2, %v5295_v19  ;;  %v7537_v28 = vld [vmem:[#allocation18_spill] sm:$0xff] }
 0x104   : > { %5251 = vmatpush3.bf16.xpose.msk.msra.mxu0 %vm5875_vm2, %v5249_v26  ;;  %5298 = vmatprep.subr.bf16.mxu1 %v7482_v22  ;;  %v5341_v30 = vpack.c.bf16 %v7537_v28, %v7536_v39  ;;  %v7538_v26 = vld [vmem:[#allocation15_spill] sm:$0xff] }
 0x105   : > { %5254 = vmatprep.subr.msk.bf16.mxu0 %vm5875_vm2, %v5252_v41  ;;  %4828 = vmatprep.mubr.msk.f32.mxu1 %vm5807_vm0, %v7492_v34  ;;  %v5344_v36 = vpack.c.bf16 %v7539_v27, %v7538_v26  ;;  %v7559_v39 = vld [vmem:[#allocation43_spill] sm:$0xff]  ;;  %v7561_v26 = vld [vmem:[#allocation45_spill] sm:$0xff] }
 0x106   : > { %4417 = vmatprep.mubr.msk.f32.mxu0 %vm298_vm1, %v6614_v8  ;;  %v7560_v28 = vld [vmem:[#allocation47_spill] sm:$0xff]  ;;  %v7562_v27 = vld [vmem:[#allocation49_spill] sm:$0xff] }
 0x10b   : > { %5301 = vmatpush3.bf16.xpose.msk.msra.mxu1 %vm5875_vm2, %v5299_v59  ;;  %v7541_v59 = vld [vmem:[#allocation22_spill] sm:$0xff] }
 0x10c   : > { %5257 = vmatpush3.bf16.xpose.msk.msra.mxu0 %vm5875_vm2, %v5255_v7  ;;  %5302 = vmatprep.subr.bf16.mxu1 %v7482_v22 }
 0x10d   : > { %5260 = vmatprep.subr.msk.bf16.mxu0 %vm5875_vm2, %v5258_v9  ;;  %v7542_v9 = vld [vmem:[#allocation19_spill] sm:$0xff] }
 0x113   : > { %5305 = vmatpush3.bf16.xpose.msk.msra.mxu1 %vm5875_vm2, %v5303_v13  ;;  %v7543_v13 = vld [vmem:[#allocation24_spill] sm:$0xff] }
 0x114   : > { %5263 = vmatpush3.bf16.xpose.msk.msra.mxu0 %vm5875_vm2, %v5261_v11  ;;  %5306 = vmatprep.subr.bf16.mxu1 %v7482_v22  ;;  %v5347_v11 = vpack.c.bf16 %v7543_v13, %v7542_v9  ;;  %v7566_v9 = vld [vmem:[#allocation53_spill] sm:$0xff] }
 0x115   : > { %5266 = vmatprep.subr.msk.bf16.mxu0 %vm5875_vm2, %v5264_v32  ;;  %v7544_v32 = vld [vmem:[#allocation21_spill] sm:$0xff] }
 0x11b   : > { %5309 = vmatpush3.bf16.xpose.msk.msra.mxu1 %vm5875_vm2, %v5307_v2  ;;  %v7545_v2 = vld [vmem:[#allocation26_spill] sm:$0xff] }
 0x11c   : > { %5269 = vmatpush3.bf16.xpose.msk.msra.mxu0 %vm5875_vm2, %v5267_v62  ;;  %5310 = vmatprep.subr.bf16.mxu1 %v7482_v22  ;;  %v5350_v62 = vpack.c.bf16 %v7545_v2, %v7544_v32  ;;  %v7568_v32 = vld [vmem:[#allocation55_spill] sm:$0xff] }
 0x11d   : > { %5272 = vmatprep.subr.msk.bf16.mxu0 %vm5875_vm2, %v5270_v4  ;;  %v7546_v4 = vld [vmem:[#allocation23_spill] sm:$0xff] }
 0x123   : > { %5313 = vmatpush3.bf16.xpose.msk.msra.mxu1 %vm5875_vm2, %v5311_v5  ;;  %v7547_v5 = vld [vmem:[#allocation28_spill] sm:$0xff] }
 0x124   : > { %5275 = vmatpush3.bf16.xpose.msk.msra.mxu0 %vm5875_vm2, %v5273_v53  ;;  %5314 = vmatprep.subr.bf16.mxu1 %v7482_v22  ;;  %v5391_v53 = vpack.c.bf16 %v7547_v5, %v7546_v4  ;;  %v7570_v4 = vld [vmem:[#allocation57_spill] sm:$0xff] }
 0x125   : > { %5278 = vmatprep.subr.msk.bf16.mxu0 %vm5875_vm2, %v5276_v56  ;;  %v7548_v56 = vld [vmem:[#allocation25_spill] sm:$0xff] }
 0x12b   : > { %5317 = vmatpush3.bf16.xpose.msk.msra.mxu1 %vm5875_vm2, %v5315_v61  ;;  %v7549_v61 = vld [vmem:[#allocation30_spill] sm:$0xff] }
 0x12c   : > { %5281 = vmatpush3.bf16.xpose.msk.msra.mxu0 %vm5875_vm2, %v5279_v44  ;;  %5318 = vmatprep.subr.bf16.mxu1 %v7482_v22  ;;  %v5353_v44 = vpack.c.bf16 %v7549_v61, %v7548_v56  ;;  %v7572_v56 = vld [vmem:[#allocation59_spill] sm:$0xff] }
 0x12d   : > { %5284 = vmatprep.subr.msk.bf16.mxu0 %vm5875_vm2, %v5282_v47  ;;  %v7550_v47 = vld [vmem:[#allocation27_spill] sm:$0xff] }
 0x133   : > { %5321 = vmatpush3.bf16.xpose.msk.msra.mxu1 %vm5875_vm2, %v5319_v52  ;;  %v7551_v52 = vld [vmem:[#allocation32_spill] sm:$0xff] }
 0x134   : > { %5287 = vmatpush3.bf16.xpose.msk.msra.mxu0 %vm5875_vm2, %v5285_v35  ;;  %5322 = vmatprep.subr.bf16.mxu1 %v7482_v22  ;;  %v5356_v35 = vpack.c.bf16 %v7551_v52, %v7550_v47  ;;  %v7574_v47 = vld [vmem:[#allocation61_spill] sm:$0xff] }
 0x135   : > { %5290 = vmatprep.subr.msk.bf16.mxu0 %vm5875_vm2, %v5288_v24  ;;  %v6805_v24 = vld [vmem:[%s5871_s23 + $0x101] sm:$0xff] }
 0x13b   : > { %5325 = vmatpush3.bf16.xpose.msk.msra.mxu1 %vm5875_vm2, %v5323_v43  ;;  %v7552_v43 = vld [vmem:[#allocation29_spill] sm:$0xff] }
 0x13c   : > { %5293 = vmatpush3.bf16.xpose.msk.msra.mxu0 %vm5875_vm2, %v5291_v15  ;;  %5374 = vmatprep.subr.bf16.mxu1 %v7482_v22  ;;  %v7553_v15 = vld [vmem:[#allocation34_spill] sm:$0xff] }
 0x13d   : > { %5328 = vmatprep.subr.msk.bf16.mxu0 %vm5875_vm2, %v5326_v31  ;;  %v5395_v31 = vpack.c.bf16 %v7553_v15, %v7552_v43  ;;  %v7576_v43 = vld [vmem:[#allocation63_spill] sm:$0xff] }
 0x142   : > { %4829 = vmatmul.mubr.msk.f32.vlgmr.msra.gmra.mrb[6].mxu1 %vm298_vm1, %v6614_v8 }
 0x143   : > { %4418 = vmatmul.mubr.msk.f32.vlgmr.msra.gmra.mrb[0].mxu0 %vm298_vm1, %v6614_v8  ;;  %5377 = vmatpush3.bf16.xpose.msk.msra.mxu1 %vm5875_vm2, %v5375_v49  ;;  %v7540_v8 = vld [vmem:[#allocation17_spill] sm:$0xff]  ;;  %v7555_v49 = vld [vmem:[#allocation36_spill] sm:$0xff] }
 0x144   : > { %5331 = vmatpush3.bf16.xpose.msk.msra.mxu0 %vm5875_vm2, %v5329_v16  ;;  %5378 = vmatprep.subr.bf16.mxu1 %v7482_v22  ;;  %v5387_v7 = vpack.c.bf16 %v7541_v59, %v7540_v8  ;;  %v5359_v50 = vpack.c.bf16 %v7555_v49, %v7554_v58  ;;  %v5362_v16 = vpack.c.bf16 %v6805_v24, %v7556_v51  ;;  %v7564_v8 = vld [vmem:[#allocation51_spill] sm:$0xff]  ;;  %v7578_v58 = vld [vmem:[#allocation65_spill] sm:$0xff] }
 0x145   : > { %5334 = vmatprep.subr.msk.bf16.mxu0 %vm5875_vm2, %v5332_v14  ;;  %4863 = vmatprep.mubr.msk.f32.mxu1 %vm5807_vm0, %v7492_v34  ;;  %v6827_v14 = vld [vmem:[%s5871_s23 + $0x109] sm:$0xff] }
 0x146   : > { %4468 = vmatprep.mubr.msk.f32.mxu0 %vm298_vm1, %v6738_v20 }
 0x14b   : > { %5381 = vmatpush3.bf16.xpose.msk.msra.mxu1 %vm5875_vm2, %v5379_v18  ;;  %v5399_v18 = vpack.c.bf16 %v6819_v40, %v7557_v60  ;;  %v7580_v60 = vld [vmem:[#allocation67_spill] sm:$0xff] }
 0x14c   : > { %5337 = vmatpush3.bf16.xpose.msk.msra.mxu0 %vm5875_vm2, %v5335_v12  ;;  %5382 = vmatprep.subr.bf16.mxu1 %v7482_v22  ;;  %v5368_v12 = vpack.c.bf16 %v6830_v17, %v6827_v14 }
 0x14d   : > { %5340 = vmatprep.subr.msk.bf16.mxu0 %vm5875_vm2, %v5338_v55  ;;  %v6852_v55 = vld [vmem:[%s5871_s23 + $0x89] sm:$0xff] }
 0x153   : > { %5385 = vmatpush3.bf16.xpose.msk.msra.mxu1 %vm5875_vm2, %v5383_v46  ;;  %v5371_v46 = vpack.c.bf16 %v6855_v48, %v6852_v55 }
 0x154   : > { %5343 = vmatpush3.bf16.xpose.msk.msra.mxu0 %vm5875_vm2, %v5341_v30  ;;  %5386 = vmatprep.subr.bf16.mxu1 %v7482_v22  ;;  %v5406_v30 = vpack.c.bf16 %v7560_v28, %v7559_v39 }
 0x155   : > { %v6774_v19 = vpop.f32.mrb[0].mxu1  ;;  %5346 = vmatprep.subr.msk.bf16.mxu0 %vm5875_vm2, %v5344_v36  ;;  %v5455_v36 = vpack.c.bf16 %v7562_v27, %v7561_v26  ;;  %v7587_v27 = vld [vmem:[#allocation72_spill] sm:$0xff] }
 0x156   : > { %v4725_v41 = vpop.f32.mrb[1].mxu1 }
 0x157   : > { %v7563_v41 = vld [vmem:[#allocation46_spill] sm:$0xff] }
 0x158   : > { %v5409_v59 = vpack.c.bf16 %v7564_v8, %v7563_v41  ;;  %v7588_v41 = vld [vmem:[#allocation73_spill] sm:$0xff] }
 0x15b   : > { %5389 = vmatpush3.bf16.xpose.msk.msra.mxu1 %vm5875_vm2, %v5387_v7  ;;  %v7565_v7 = vld [vmem:[#allocation48_spill] sm:$0xff] }
 0x15c   : > { %5349 = vmatpush3.bf16.xpose.msk.msra.mxu0 %vm5875_vm2, %v5347_v11  ;;  %5390 = vmatprep.subr.bf16.mxu1 %v7482_v22  ;;  %v5412_v13 = vpack.c.bf16 %v7566_v9, %v7565_v7  ;;  %v6882_v11 = vpop.permute.xlu0 %1949  ;;  %v6961_v9 = vld [vmem:[%s5871_s23 + $0x182] sm:$0xff] }
 0x15d   : > { %5352 = vmatprep.subr.msk.bf16.mxu0 %vm5875_vm2, %v5350_v62  ;;  %v7569_v62 = vld [vmem:[#allocation52_spill] sm:$0xff] }
 0x15e   : > { %v5415_v5 = vpack.c.bf16 %v7570_v4, %v7569_v62  ;;  %v6977_v4 = vld [vmem:[%s5871_s23 + $0x18a] sm:$0xff] }
 0x163   : > { %5393 = vmatpush3.bf16.xpose.msk.msra.mxu1 %vm5875_vm2, %v5391_v53  ;;  %v7571_v53 = vld [vmem:[#allocation54_spill] sm:$0xff] }
 0x164   : > { %5355 = vmatpush3.bf16.xpose.msk.msra.mxu0 %vm5875_vm2, %v5353_v44  ;;  %5394 = vmatprep.subr.bf16.mxu1 %v7482_v22  ;;  %v5418_v61 = vpack.c.bf16 %v7572_v56, %v7571_v53  ;;  %v7573_v44 = vld [vmem:[#allocation56_spill] sm:$0xff]  ;;  %v3953_v53 = vld [vmem:[%s5871_s23 + $0xb8] sm:$0xff] }
 0x165   : > { %5358 = vmatprep.subr.msk.bf16.mxu0 %vm5875_vm2, %v5356_v35  ;;  %v5463_v52 = vpack.c.bf16 %v7574_v47, %v7573_v44  ;;  %v7575_v35 = vld [vmem:[#allocation58_spill] sm:$0xff] }
 0x166   : > { %v5421_v15 = vpack.c.bf16 %v7576_v43, %v7575_v35  ;;  %v7597_v44 = vld [vmem:[#allocation42_spill] sm:$0xff]  ;;  %v3968_v35 = vld [vmem:[%s5871_s23 + $0x130] sm:$0xff]  ;;  %v3969_v43 = vld [vmem:[%s5871_s23 + $0x138] sm:$0xff] }
 0x16b   : > { %5397 = vmatpush3.bf16.xpose.msk.msra.mxu1 %vm5875_vm2, %v5395_v31  ;;  %v7577_v31 = vld [vmem:[#allocation60_spill] sm:$0xff] }
 0x16c   : > { %5361 = vmatpush3.bf16.xpose.msk.msra.mxu0 %vm5875_vm2, %v5359_v50  ;;  %5398 = vmatprep.subr.bf16.mxu1 %v7482_v22  ;;  %v5424_v49 = vpack.c.bf16 %v7578_v58, %v7577_v31  ;;  %v3937_v31 = vld [vmem:[%s5871_s23 + $0x38] sm:$0xff]  ;;  %v3954_v58 = vld [vmem:[%s5871_s23 + $0xc0] sm:$0xff] }
 0x16d   : > { %5364 = vmatprep.subr.msk.bf16.mxu0 %vm5875_vm2, %v5362_v16  ;;  %v7579_v16 = vld [vmem:[#allocation62_spill] sm:$0xff] }
 0x173   : > { %5401 = vmatpush3.bf16.xpose.msk.msra.mxu1 %vm5875_vm2, %v5399_v18  ;;  %v5467_v18 = vpack.c.bf16 %v7580_v60, %v7579_v16  ;;  %v7009_v60 = vpop.permute.xlu1 %2291 }
 0x174   : > { %5367 = vmatpush3.bf16.xpose.msk.msra.mxu0 %vm5875_vm2, %v5365_v6  ;;  %5402 = vmatprep.subr.bf16.mxu1 %v7482_v22  ;;  %v7582_v6 = vld [vmem:[#allocation69_spill] sm:$0xff] }
 0x175   : > { %5370 = vmatprep.subr.msk.bf16.mxu0 %vm5875_vm2, %v5368_v12  ;;  %v5427_v12 = vpack.c.bf16 %v7582_v6, %v7581_v1  ;;  %v3971_v1 = vld [vmem:[%s5871_s23 + $0x148] sm:$0xff]  ;;  %v3938_v6 = vld [vmem:[%s5871_s23 + $0x40] sm:$0xff] }
 0x17b   : > { %5405 = vmatpush3.bf16.xpose.msk.msra.mxu1 %vm5875_vm2, %v5403_v54  ;;  %v7583_v54 = vld [vmem:[#allocation66_spill] sm:$0xff] }
 0x17c   : > { %5373 = vmatpush3.bf16.xpose.msk.msra.mxu0 %vm5875_vm2, %v5371_v46  ;;  %5454 = vmatprep.subr.bf16.mxu1 %v7482_v22  ;;  %v7584_v46 = vld [vmem:[#allocation71_spill] sm:$0xff] }
 0x17d   : > { %5408 = vmatprep.subr.msk.bf16.mxu0 %vm5875_vm2, %v5406_v30  ;;  %v5430_v39 = vpack.c.bf16 %v7584_v46, %v7583_v54  ;;  %v7586_v30 = vld [vmem:[#allocation70_spill] sm:$0xff]  ;;  %v3957_v54 = vld [vmem:[%s5871_s23 + $0xd8] sm:$0xff] }
 0x17e   : > { %v5433_v26 = vpack.c.bf16 %v6553_v21, %v7586_v30  ;;  %v7589_v21 = vld [vmem:[#allocation74_spill] sm:$0xff]  ;;  %v3973_v30 = vld [vmem:[%s5871_s23 + $0x158] sm:$0xff] }
 0x17f   : > { %v5439_v8 = vpack.c.bf16 %v6584_v25, %v7589_v21  ;;  %v5479_v25 = vpack.c.bf16 %v6961_v9, %v6579_v29  ;;  %v6980_v29 = vld [vmem:[%s5871_s23 + $0x192] sm:$0xff] }
 0x180   : > { %v5483_v56 = vpack.c.bf16 %v6980_v29, %v6977_v4 }
 0x182   : > { %4864 = vmatmul.mubr.msk.f32.vlgmr.msra.gmra.mrb[8].mxu1 %vm298_vm1, %v6738_v20 }
 0x183   : > { %4469 = vmatmul.mubr.msk.f32.vlgmr.msra.gmra.mrb[0].mxu0 %vm298_vm1, %v6738_v20  ;;  %5457 = vmatpush3.bf16.xpose.msk.msra.mxu1 %vm5875_vm2, %v5455_v36  ;;  %v7567_v20 = vld [vmem:[#allocation50_spill] sm:$0xff]  ;;  %v5436_v36 = vpack.c.bf16 %v6559_v37, %v7587_v27  ;;  %v7590_v37 = vld [vmem:[#allocation75_spill] sm:$0xff]  ;;  %v3941_v27 = vld [vmem:[%s5871_s23 + $0x58] sm:$0xff] }
 0x184   : > { %5411 = vmatpush3.bf16.xpose.msk.msra.mxu0 %vm5875_vm2, %v5409_v59  ;;  %5458 = vmatprep.subr.bf16.mxu1 %v7482_v22  ;;  %v5459_v2 = vpack.c.bf16 %v7568_v32, %v7567_v20  ;;  %v7591_v59 = vld [vmem:[#allocation40_spill] sm:$0xff]  ;;  %v7594_v32 = vld [vmem:[#allocation41_spill] sm:$0xff] }
 0x185   : > { %5414 = vmatprep.subr.msk.bf16.mxu0 %vm5875_vm2, %v5412_v13  ;;  %4898 = vmatprep.mubr.msk.f32.mxu1 %vm5807_vm0, %v7492_v34  ;;  %v5442_v7 = vpack.c.bf16 %v7591_v59, %v7590_v37  ;;  %v7593_v13 = vld [vmem:[#allocation38_spill] sm:$0xff]  ;;  %v3975_v59 = vld [vmem:[%s5871_s23 + $0x168] sm:$0xff] }
 0x186   : > { %4519 = vmatprep.mubr.msk.f32.mxu0 %vm298_vm1, %v6882_v11  ;;  %v3974_v37 = vld [vmem:[%s5871_s23 + $0x160] sm:$0xff] }
 0x18b   : > { %5461 = vmatpush3.bf16.xpose.msk.msra.mxu1 %vm5875_vm2, %v5459_v2  ;;  %v7595_v2 = vld [vmem:[#allocation44_spill] sm:$0xff] }
 0x18c   : > { %5417 = vmatpush3.bf16.xpose.msk.msra.mxu0 %vm5875_vm2, %v5415_v5  ;;  %5462 = vmatprep.subr.bf16.mxu1 %v7482_v22  ;;  %v5448_v62 = vpack.c.bf16 %v7595_v2, %v7594_v32  ;;  %v3952_v5 = vld [vmem:[%s5871_s23 + $0xb0] sm:$0xff]  ;;  %v3961_v2 = vld [vmem:[%s5871_s23 + $0xf8] sm:$0xff] }
 0x18d   : > { %5420 = vmatprep.subr.msk.bf16.mxu0 %vm5875_vm2, %v5418_v61  ;;  %v7596_v61 = vld [vmem:[#allocation39_spill] sm:$0xff]  ;;  %v3960_v32 = vld [vmem:[%s5871_s23 + $0xf0] sm:$0xff] }
 0x18e   : > { %v5451_v47 = vpack.c.bf16 %v7597_v44, %v7596_v61  ;;  %v3944_v61 = vld [vmem:[%s5871_s23 + $0x70] sm:$0xff]  ;;  %v3945_v44 = vld [vmem:[%s5871_s23 + $0x78] sm:$0xff] }
 0x193   : > { %5465 = vmatpush3.bf16.xpose.msk.msra.mxu1 %vm5875_vm2, %v5463_v52  ;;  %v5486_v52 = vpack.c.bf16 %v3953_v53, %v3952_v5  ;;  %v5510_v53 = vpack.c.bf16 %v3961_v2, %v3960_v32  ;;  %v7126_v32 = vpop.permute.xlu0 %2633  ;;  %v4068_v2 = vld [vmem:[%s5871_s23 + $0x141] sm:$0xff] }
 0x194   : > { %5423 = vmatpush3.bf16.xpose.msk.msra.mxu0 %vm5875_vm2, %v5421_v15  ;;  %5466 = vmatprep.subr.bf16.mxu1 %v7482_v22  ;;  %v3936_v15 = vld [vmem:[%s5871_s23 + $0x30] sm:$0xff] }
 0x195   : > { %v869_v50 = vpop.f32.mrb[2].mxu1  ;;  %5426 = vmatprep.subr.msk.bf16.mxu0 %vm5875_vm2, %v5424_v49  ;;  %v3955_v49 = vld [vmem:[%s5871_s23 + $0xc8] sm:$0xff] }
 0x196   : > { %v6921_v0 = vadd.f32 %v869_v50, %v6774_v19  ;;  %v4760_v51 = vpop.f32.mrb[3].mxu1  ;;  %v7585_v19 = vld [vmem:[#allocation68_spill] sm:$0xff]  ;;  %v5535_v50 = vpack.c.bf16 %v3969_v43, %v3968_v35  ;;  %v5492_v16 = vpack.c.bf16 %v3955_v49, %v3954_v58  ;;  %v5513_v43 = vpack.c.bf16 %v3945_v44, %v3944_v61  ;;  %v3947_v58 = vld [vmem:[%s5871_s23 + $0x88] sm:$0xff] }
 0x197   : > { %v5471_v28 = vpack.c.bf16 %v6545_v45, %v7585_v19  ;;  %v5475_v45 = vpack.c.bf16 %v6576_v38, %v7588_v41  ;;  %v7592_v38 = vld [vmem:[#allocation76_spill] sm:$0xff]  ;;  %v5489_v51 = vpack.c.bf16 %v3937_v31, %v3936_v15  ;;  %v3959_v41 = vld [vmem:[%s5871_s23 + $0xe8] sm:$0xff]  ;;  %v3946_v31 = vld [vmem:[%s5871_s23 + $0x80] sm:$0xff] }
 0x198   : > { %v5445_v20 = vpack.c.bf16 %v7593_v13, %v7592_v38  ;;  %v3943_v38 = vld [vmem:[%s5871_s23 + $0x68] sm:$0xff]  ;;  %v3964_v49 = vld [vmem:[%s5871_s23 + $0x110] sm:$0xff] }
 0x19b   : > { %5469 = vmatpush3.bf16.xpose.msk.msra.mxu1 %vm5875_vm2, %v5467_v18  ;;  %v3970_v18 = vld [vmem:[%s5871_s23 + $0x140] sm:$0xff] }
 0x19c   : > { %5429 = vmatpush3.bf16.xpose.msk.msra.mxu0 %vm5875_vm2, %v5427_v12  ;;  %5470 = vmatprep.subr.bf16.mxu1 %v7482_v22  ;;  %v3956_v12 = vld [vmem:[%s5871_s23 + $0xd0] sm:$0xff]  ;;  %v5539_v46 = vpack.c.bf16 %v3971_v1, %v3970_v18  ;;  %v3981_v1 = vld [vmem:[%s5871_s23 + $0x198] sm:$0xff] }
 0x19d   : > { %5432 = vmatprep.subr.msk.bf16.mxu0 %vm5875_vm2, %v5430_v39  ;;  %v5498_v19 = vpack.c.bf16 %v3957_v54, %v3956_v12  ;;  %v5559_v12 = vpack.c.bf16 %v3981_v1, %v6709_v42  ;;  %v3950_v42 = vld [vmem:[%s5871_s23 + $0xa0] sm:$0xff] }
 0x19e   : > { %v4040_v1 = vld [vmem:[%s5871_s23 + $0x61] sm:$0xff] }
 0x1a3   : > { %5473 = vmatpush3.bf16.xpose.msk.msra.mxu1 %vm5875_vm2, %v5471_v28  ;;  %v3972_v28 = vld [vmem:[%s5871_s23 + $0x150] sm:$0xff] }
 0x1a4   : > { %5435 = vmatpush3.bf16.xpose.msk.msra.mxu0 %vm5875_vm2, %v5433_v26  ;;  %5474 = vmatprep.subr.bf16.mxu1 %v7482_v22  ;;  %v3940_v26 = vld [vmem:[%s5871_s23 + $0x50] sm:$0xff] }
 0x1a5   : > { %5438 = vmatprep.subr.msk.bf16.mxu0 %vm5875_vm2, %v5436_v36  ;;  %v3958_v36 = vld [vmem:[%s5871_s23 + $0xe0] sm:$0xff]  ;;  %v5501_v21 = vpack.c.bf16 %v3941_v27, %v3940_v26 }
 0x1a6   : > { %v4051_v26 = vld [vmem:[%s5871_s23 + $0xb9] sm:$0xff] }
 0x1ab   : > { %5477 = vmatpush3.bf16.xpose.msk.msra.mxu1 %vm5875_vm2, %v5475_v45  ;;  %v5543_v45 = vpack.c.bf16 %v3973_v30, %v3972_v28  ;;  %v3951_v28 = vld [vmem:[%s5871_s23 + $0xa8] sm:$0xff]  ;;  %v4050_v30 = vld [vmem:[%s5871_s23 + $0xb1] sm:$0xff] }
 0x1ac   : > { %5441 = vmatpush3.bf16.xpose.msk.msra.mxu0 %vm5875_vm2, %v5439_v8  ;;  %5478 = vmatprep.subr.bf16.mxu1 %v7482_v22  ;;  %v5504_v8 = vpack.c.bf16 %v3959_v41, %v3958_v36  ;;  %v5531_v36 = vpack.c.bf16 %v3951_v28, %v3950_v42  ;;  %v5566_v41 = vpack.c.bf16 %v4051_v26, %v4050_v30  ;;  %v4075_v42 = vld [vmem:[%s5871_s23 + $0x179] sm:$0xff] }
 0x1ad   : > { %5444 = vmatprep.subr.msk.bf16.mxu0 %vm5875_vm2, %v5442_v7  ;;  %v4043_v28 = vld [vmem:[%s5871_s23 + $0x79] sm:$0xff] }
 0x1b3   : > { %5481 = vmatpush3.bf16.xpose.msk.msra.mxu1 %vm5875_vm2, %v5479_v25  ;;  %v3942_v25 = vld [vmem:[%s5871_s23 + $0x60] sm:$0xff] }
 0x1b4   : > { %5447 = vmatpush3.bf16.xpose.msk.msra.mxu0 %vm5875_vm2, %v5445_v20  ;;  %5482 = vmatprep.subr.bf16.mxu1 %v7482_v22  ;;  %v5507_v5 = vpack.c.bf16 %v3943_v38, %v3942_v25 }
 0x1b5   : > { %5450 = vmatprep.subr.msk.bf16.mxu0 %vm5875_vm2, %v5448_v62  ;;  %v5547_v62 = vpack.c.bf16 %v3975_v59, %v3974_v37  ;;  %v4035_v37 = vld [vmem:[%s5871_s23 + $0x39] sm:$0xff]  ;;  %v4052_v59 = vld [vmem:[%s5871_s23 + $0xc1] sm:$0xff] }
 0x1bb   : > { %5485 = vmatpush3.bf16.xpose.msk.msra.mxu1 %vm5875_vm2, %v5483_v56  ;;  %v3976_v56 = vld [vmem:[%s5871_s23 + $0x170] sm:$0xff] }
 0x1bc   : > { %5453 = vmatpush3.bf16.xpose.msk.msra.mxu0 %vm5875_vm2, %v5451_v47  ;;  %5534 = vmatprep.subr.bf16.mxu1 %v7482_v22  ;;  %v3962_v47 = vld [vmem:[%s5871_s23 + $0x100] sm:$0xff] }
 0x1bd   : > { %5488 = vmatprep.subr.msk.bf16.mxu0 %vm5875_vm2, %v5486_v52  ;;  %v3963_v52 = vld [vmem:[%s5871_s23 + $0x108] sm:$0xff] }
 0x1be   : > { %v5516_v15 = vpack.c.bf16 %v3963_v52, %v3962_v47  ;;  %v4070_v47 = vld [vmem:[%s5871_s23 + $0x151] sm:$0xff]  ;;  %v4071_v52 = vld [vmem:[%s5871_s23 + $0x159] sm:$0xff] }
 0x1c2   : > { %4899 = vmatmul.mubr.msk.f32.vlgmr.msra.gmra.mrb[10].mxu1 %vm298_vm1, %v6882_v11 }
 0x1c3   : > { %4520 = vmatmul.mubr.msk.f32.vlgmr.msra.gmra.mrb[0].mxu0 %vm298_vm1, %v6882_v11  ;;  %5537 = vmatpush3.bf16.xpose.msk.msra.mxu1 %vm5875_vm2, %v5535_v50  ;;  %v3939_v11 = vld [vmem:[%s5871_s23 + $0x48] sm:$0xff]  ;;  %v3965_v50 = vld [vmem:[%s5871_s23 + $0x118] sm:$0xff] }
 0x1c4   : > { %5491 = vmatpush3.bf16.xpose.msk.msra.mxu0 %vm5875_vm2, %v5489_v51  ;;  %5538 = vmatprep.subr.bf16.mxu1 %v7482_v22  ;;  %v5495_v39 = vpack.c.bf16 %v3939_v11, %v3938_v6  ;;  %v5555_v51 = vpack.c.bf16 %v6706_v33, %v6690_v10  ;;  %v5522_v18 = vpack.c.bf16 %v3965_v50, %v3964_v49  ;;  %v3948_v10 = vld [vmem:[%s5871_s23 + $0x90] sm:$0xff]  ;;  %v3949_v33 = vld [vmem:[%s5871_s23 + $0x98] sm:$0xff]  ;;  %v3966_v6 = vld [vmem:[%s5871_s23 + $0x120] sm:$0xff] }
 0x1c5   : > { %5494 = vmatprep.subr.msk.bf16.mxu0 %vm5875_vm2, %v5492_v16  ;;  %4933 = vmatprep.mubr.msk.f32.mxu1 %vm5807_vm0, %v7492_v34  ;;  %v5519_v16 = vpack.c.bf16 %v3947_v58, %v3946_v31  ;;  %v3967_v11 = vld [vmem:[%s5871_s23 + $0x128] sm:$0xff]  ;;  %v5525_v54 = vpack.c.bf16 %v3949_v33, %v3948_v10  ;;  %v5623_v58 = vpack.c.bf16 %v4071_v52, %v4070_v47  ;;  %v7243_v47 = vpop.permute.xlu1 %2975 }
 0x1c6   : > { %4570 = vmatprep.mubr.msk.f32.mxu0 %vm298_vm1, %v7009_v60  ;;  %v4057_v31 = vld [vmem:[%s5871_s23 + $0xe9] sm:$0xff] }
 0x1c7   : > { %v4041_v10 = vld [vmem:[%s5871_s23 + $0x69] sm:$0xff] }
 0x1c8   : > { %v4166_v52 = vld [vmem:[%s5871_s23 + $0x142] sm:$0xff] }
 0x1cb   : > { %5541 = vmatpush3.bf16.xpose.msk.msra.mxu1 %vm5875_vm2, %v5539_v46  ;;  %v5528_v46 = vpack.c.bf16 %v3967_v11, %v3966_v6  ;;  %v4058_v11 = vld [vmem:[%s5871_s23 + $0xf1] sm:$0xff] }
 0x1cc   : > { %5497 = vmatpush3.bf16.xpose.msk.msra.mxu0 %vm5875_vm2, %v5495_v39  ;;  %5542 = vmatprep.subr.bf16.mxu1 %v7482_v22  ;;  %v3982_v39 = vld [vmem:[%s5871_s23 + $0x1a0] sm:$0xff] }
 0x1cd   : > { %5500 = vmatprep.subr.msk.bf16.mxu0 %vm5875_vm2, %v5498_v19  ;;  %v3983_v19 = vld [vmem:[%s5871_s23 + $0x1a8] sm:$0xff] }
 0x1ce   : > { %v5563_v27 = vpack.c.bf16 %v3983_v19, %v3982_v39  ;;  %v4074_v19 = vld [vmem:[%s5871_s23 + $0x171] sm:$0xff] }
 0x1cf   : > { %v5631_v30 = vpack.c.bf16 %v4075_v42, %v4074_v19  ;;  %v4138_v19 = vld [vmem:[%s5871_s23 + $0x62] sm:$0xff]  ;;  %v4139_v42 = vld [vmem:[%s5871_s23 + $0x6a] sm:$0xff] }
 0x1d3   : > { %5545 = vmatpush3.bf16.xpose.msk.msra.mxu1 %vm5875_vm2, %v5543_v45  ;;  %v4066_v45 = vld [vmem:[%s5871_s23 + $0x131] sm:$0xff] }
 0x1d4   : > { %5503 = vmatpush3.bf16.xpose.msk.msra.mxu0 %vm5875_vm2, %v5501_v21  ;;  %5546 = vmatprep.subr.bf16.mxu1 %v7482_v22  ;;  %v4067_v21 = vld [vmem:[%s5871_s23 + $0x139] sm:$0xff] }
 0x1d5   : > { %v1208_v7 = vpop.f32.mrb[4].mxu1  ;;  %5506 = vmatprep.subr.msk.bf16.mxu0 %vm5875_vm2, %v5504_v8  ;;  %v4034_v8 = vld [vmem:[%s5871_s23 + $0x31] sm:$0xff]  ;;  %v5615_v25 = vpack.c.bf16 %v4067_v21, %v4066_v45  ;;  %v5599_v45 = vpack.c.bf16 %v6852_v55, %v6824_v23  ;;  %v4064_v23 = vld [vmem:[%s5871_s23 + $0x121] sm:$0xff] }
 0x1d6   : > { %v7051_v13 = vadd.f32 %v1208_v7, %v6921_v0  ;;  %v4795_v20 = vpop.f32.mrb[5].mxu1  ;;  %v3977_v0 = vld [vmem:[%s5871_s23 + $0x178] sm:$0xff]  ;;  %v4053_v7 = vld [vmem:[%s5871_s23 + $0xc9] sm:$0xff]  ;;  %v5569_v38 = vpack.c.bf16 %v4035_v37, %v4034_v8  ;;  %v4080_v8 = vld [vmem:[%s5871_s23 + $0x1a1] sm:$0xff] }
 0x1d7   : > { %v5551_v35 = vpack.c.bf16 %v3977_v0, %v3976_v56  ;;  %v5572_v20 = vpack.c.bf16 %v4053_v7, %v4052_v59  ;;  %v4055_v56 = vld [vmem:[%s5871_s23 + $0xd9] sm:$0xff]  ;;  %v4081_v37 = vld [vmem:[%s5871_s23 + $0x1a9] sm:$0xff] }
 0x1d8   : > { %v4148_v59 = vld [vmem:[%s5871_s23 + $0xb2] sm:$0xff]  ;;  %v4149_v7 = vld [vmem:[%s5871_s23 + $0xba] sm:$0xff] }
 0x1db   : > { %5549 = vmatpush3.bf16.xpose.msk.msra.mxu1 %vm5875_vm2, %v5547_v62  ;;  %v4069_v62 = vld [vmem:[%s5871_s23 + $0x149] sm:$0xff] }
 0x1dc   : > { %5509 = vmatpush3.bf16.xpose.msk.msra.mxu0 %vm5875_vm2, %v5507_v5  ;;  %5550 = vmatprep.subr.bf16.mxu1 %v7482_v22  ;;  %v4036_v5 = vld [vmem:[%s5871_s23 + $0x41] sm:$0xff]  ;;  %v5619_v0 = vpack.c.bf16 %v4069_v62, %v4068_v2  ;;  %v4164_v2 = vld [vmem:[%s5871_s23 + $0x132] sm:$0xff] }
 0x1dd   : > { %5512 = vmatprep.subr.msk.bf16.mxu0 %vm5875_vm2, %v5510_v53  ;;  %v4054_v53 = vld [vmem:[%s5871_s23 + $0xd1] sm:$0xff]  ;;  %v4165_v62 = vld [vmem:[%s5871_s23 + $0x13a] sm:$0xff] }
 0x1de   : > { %v5578_v44 = vpack.c.bf16 %v4055_v56, %v4054_v53  ;;  %v4150_v53 = vld [vmem:[%s5871_s23 + $0xc2] sm:$0xff]  ;;  %v4151_v56 = vld [vmem:[%s5871_s23 + $0xca] sm:$0xff] }
 0x1e3   : > { %5553 = vmatpush3.bf16.xpose.msk.msra.mxu1 %vm5875_vm2, %v5551_v35  ;;  %v4038_v35 = vld [vmem:[%s5871_s23 + $0x51] sm:$0xff] }
 0x1e4   : > { %5515 = vmatpush3.bf16.xpose.msk.msra.mxu0 %vm5875_vm2, %v5513_v43  ;;  %5554 = vmatprep.subr.bf16.mxu1 %v7482_v22  ;;  %v4039_v43 = vld [vmem:[%s5871_s23 + $0x59] sm:$0xff] }
 0x1e5   : > { %5518 = vmatprep.subr.msk.bf16.mxu0 %vm5875_vm2, %v5516_v15  ;;  %v4056_v15 = vld [vmem:[%s5871_s23 + $0xe1] sm:$0xff]  ;;  %v5581_v49 = vpack.c.bf16 %v4039_v43, %v4038_v35  ;;  %v4167_v35 = vld [vmem:[%s5871_s23 + $0x14a] sm:$0xff] }
 0x1e6   : > { %v5584_v50 = vpack.c.bf16 %v4057_v31, %v4056_v15  ;;  %v4134_v43 = vld [vmem:[%s5871_s23 + $0x42] sm:$0xff]  ;;  %v4152_v15 = vld [vmem:[%s5871_s23 + $0xd2] sm:$0xff]  ;;  %v4153_v31 = vld [vmem:[%s5871_s23 + $0xda] sm:$0xff] }
 0x1eb   : > { %5557 = vmatpush3.bf16.xpose.msk.msra.mxu1 %vm5875_vm2, %v5555_v51  ;;  %v4072_v51 = vld [vmem:[%s5871_s23 + $0x161] sm:$0xff] }
 0x1ec   : > { %5521 = vmatpush3.bf16.xpose.msk.msra.mxu0 %vm5875_vm2, %v5519_v16  ;;  %5558 = vmatprep.subr.bf16.mxu1 %v7482_v22  ;;  %v4073_v16 = vld [vmem:[%s5871_s23 + $0x169] sm:$0xff] }
 0x1ed   : > { %5524 = vmatprep.subr.msk.bf16.mxu0 %vm5875_vm2, %v5522_v18 }
 0x1f3   : > { %5561 = vmatpush3.bf16.xpose.msk.msra.mxu1 %vm5875_vm2, %v5559_v12  ;;  %v4059_v12 = vld [vmem:[%s5871_s23 + $0xf9] sm:$0xff] }
 0x1f4   : > { %5527 = vmatpush3.bf16.xpose.msk.msra.mxu0 %vm5875_vm2, %v5525_v54  ;;  %5562 = vmatprep.subr.bf16.mxu1 %v7482_v22  ;;  %v5627_v54 = vpack.c.bf16 %v4073_v16, %v4072_v51  ;;  %v5590_v39 = vpack.c.bf16 %v4059_v12, %v4058_v11  ;;  %v4169_v51 = vld [vmem:[%s5871_s23 + $0x15a] sm:$0xff]  ;;  %v4136_v16 = vld [vmem:[%s5871_s23 + $0x52] sm:$0xff] }
 0x1f5   : > { %5530 = vmatprep.subr.msk.bf16.mxu0 %vm5875_vm2, %v5528_v46  ;;  %v5587_v46 = vpack.c.bf16 %v4041_v10, %v4040_v1  ;;  %v4154_v1 = vld [vmem:[%s5871_s23 + $0xe2] sm:$0xff]  ;;  %v4155_v10 = vld [vmem:[%s5871_s23 + $0xea] sm:$0xff] }
 0x1f6   : > { %v5664_v12 = vpack.c.bf16 %v4155_v10, %v4154_v1 }
 0x1fb   : > { %5565 = vmatpush3.bf16.xpose.msk.msra.mxu1 %vm5875_vm2, %v5563_v27  ;;  %v5596_v27 = vpack.c.bf16 %v6827_v14, %v6805_v24  ;;  %v4079_v14 = vld [vmem:[%s5871_s23 + $0x199] sm:$0xff] }
 0x1fc   : > { %5533 = vmatpush3.bf16.xpose.msk.msra.mxu0 %vm5875_vm2, %v5531_v36  ;;  %5614 = vmatprep.subr.bf16.mxu1 %v7482_v22  ;;  %v4063_v36 = vld [vmem:[%s5871_s23 + $0x119] sm:$0xff] }
 0x1fd   : > { %5568 = vmatprep.subr.msk.bf16.mxu0 %vm5875_vm2, %v5566_v41  ;;  %v5635_v41 = vpack.c.bf16 %v6844_v57, %v6819_v40  ;;  %v5602_v24 = vpack.c.bf16 %v4063_v36, %v6830_v17  ;;  %v4047_v40 = vld [vmem:[%s5871_s23 + $0x99] sm:$0xff]  ;;  %v4065_v17 = vld [vmem:[%s5871_s23 + $0x129] sm:$0xff]  ;;  %v5639_v57 = vpack.c.bf16 %v4079_v14, %v6847_v63  ;;  %v4048_v63 = vld [vmem:[%s5871_s23 + $0xa1] sm:$0xff] }
 0x1fe   : > { %v5605_v55 = vpack.c.bf16 %v4047_v40, %v6855_v48  ;;  %v5608_v21 = vpack.c.bf16 %v4065_v17, %v4064_v23  ;;  %v4049_v48 = vld [vmem:[%s5871_s23 + $0xa9] sm:$0xff]  ;;  %v3267_v36 = vld [vmem:[%s7363_s2] sm:$0xff]  ;;  %v4140_v40 = vld [vmem:[%s5871_s23 + $0x72] sm:$0xff] }
 0x1ff   : > { %v4173_v14 = vld [vmem:[%s5871_s23 + $0x17a] sm:$0xff]  ;;  %v4158_v17 = vld [vmem:[%s5871_s23 + $0x102] sm:$0xff] }
 0x200   : > { %v4141_v23 = vld [vmem:[%s5871_s23 + $0x7a] sm:$0xff] }
 0x202   : > { %4934 = vmatmul.mubr.msk.f32.vlgmr.msra.gmra.mrb[12].mxu1 %vm298_vm1, %v7009_v60 }
 0x203   : > { %4571 = vmatmul.mubr.msk.f32.vlgmr.msra.gmra.mrb[0].mxu0 %vm298_vm1, %v7009_v60  ;;  %5617 = vmatpush3.bf16.xpose.msk.msra.mxu1 %vm5875_vm2, %v5615_v25  ;;  %v4037_v60 = vld [vmem:[%s5871_s23 + $0x49] sm:$0xff]  ;;  %v5643_v25 = vpack.c.bf16 %v4081_v37, %v4080_v8 }
 0x204   : > { %5571 = vmatpush3.bf16.xpose.msk.msra.mxu0 %vm5875_vm2, %v5569_v38  ;;  %5618 = vmatprep.subr.bf16.mxu1 %v7482_v22  ;;  %v5575_v61 = vpack.c.bf16 %v4037_v60, %v4036_v5  ;;  %v5611_v38 = vpack.c.bf16 %v4049_v48, %v4048_v63  ;;  %v4132_v5 = vld [vmem:[%s5871_s23 + $0x32] sm:$0xff]  ;;  %v4133_v60 = vld [vmem:[%s5871_s23 + $0x3a] sm:$0xff]  ;;  %v4142_v37 = vld [vmem:[%s5871_s23 + $0x82] sm:$0xff] }
 0x205   : > { %5574 = vmatprep.subr.msk.bf16.mxu0 %vm5875_vm2, %v5572_v20  ;;  %4968 = vmatprep.mubr.msk.f32.mxu1 %vm5807_vm0, %v7492_v34  ;;  %v5646_v20 = vpack.c.bf16 %v4149_v7, %v4148_v59  ;;  %v4143_v63 = vld [vmem:[%s5871_s23 + $0x8a] sm:$0xff]  ;;  %v4160_v48 = vld [vmem:[%s5871_s23 + $0x112] sm:$0xff]  ;;  %v4161_v59 = vld [vmem:[%s5871_s23 + $0x11a] sm:$0xff]  ;;  %v5715_v7 = vpack.c.bf16 %v6977_v4, %v6961_v9 }
 0x206   : > { %4621 = vmatprep.mubr.msk.f32.mxu0 %vm298_vm1, %v7126_v32  ;;  %v4145_v9 = vld [vmem:[%s5871_s23 + $0x9a] sm:$0xff]  ;;  %v4162_v4 = vld [vmem:[%s5871_s23 + $0x122] sm:$0xff] }
 0x20b   : > { %5621 = vmatpush3.bf16.xpose.msk.msra.mxu1 %vm5875_vm2, %v5619_v0  ;;  %v5695_v0 = vpack.c.bf16 %v4165_v62, %v4164_v2  ;;  %v4144_v2 = vld [vmem:[%s5871_s23 + $0x92] sm:$0xff]  ;;  %v4163_v62 = vld [vmem:[%s5871_s23 + $0x12a] sm:$0xff] }
 0x20c   : > { %5577 = vmatpush3.bf16.xpose.msk.msra.mxu0 %vm5875_vm2, %v5575_v61  ;;  %5622 = vmatprep.subr.bf16.mxu1 %v7482_v22  ;;  %v5649_v61 = vpack.c.bf16 %v4133_v60, %v4132_v5  ;;  %v5685_v60 = vpack.c.bf16 %v4145_v9, %v4144_v2 }
 0x20d   : > { %5580 = vmatprep.subr.msk.bf16.mxu0 %vm5875_vm2, %v5578_v44  ;;  %v5652_v44 = vpack.c.bf16 %v4151_v56, %v4150_v53  ;;  %v5688_v53 = vpack.c.bf16 %v4163_v62, %v4162_v4  ;;  %v4178_v56 = vld [vmem:[%s5871_s23 + $0x1a2] sm:$0xff] }
 0x213   : > { %5625 = vmatpush3.bf16.xpose.msk.msra.mxu1 %vm5875_vm2, %v5623_v58  ;;  %v5699_v58 = vpack.c.bf16 %v4167_v35, %v4166_v52 }
 0x214   : > { %5583 = vmatpush3.bf16.xpose.msk.msra.mxu0 %vm5875_vm2, %v5581_v49  ;;  %5626 = vmatprep.subr.bf16.mxu1 %v7482_v22 }
 0x215   : > { %v1550_v18 = vpop.f32.mrb[6].mxu1  ;;  %5586 = vmatprep.subr.msk.bf16.mxu0 %vm5875_vm2, %v5584_v50  ;;  %v5658_v50 = vpack.c.bf16 %v4153_v31, %v4152_v15 }
 0x216   : > { %v7168_v33 = vadd.f32 %v1550_v18, %v7051_v13  ;;  %v4830_v6 = vpop.f32.mrb[7].mxu1  ;;  %v4042_v13 = vld [vmem:[%s5871_s23 + $0x71] sm:$0xff]  ;;  %v4137_v18 = vld [vmem:[%s5871_s23 + $0x5a] sm:$0xff] }
 0x217   : > { %v5593_v26 = vpack.c.bf16 %v4043_v28, %v4042_v13  ;;  %v5661_v11 = vpack.c.bf16 %v4137_v18, %v4136_v16 }
 0x21b   : > { %5629 = vmatpush3.bf16.xpose.msk.msra.mxu1 %vm5875_vm2, %v5627_v54  ;;  %v4170_v54 = vld [vmem:[%s5871_s23 + $0x162] sm:$0xff] }
 0x21c   : > { %5589 = vmatpush3.bf16.xpose.msk.msra.mxu0 %vm5875_vm2, %v5587_v46  ;;  %5630 = vmatprep.subr.bf16.mxu1 %v7482_v22  ;;  %v4171_v46 = vld [vmem:[%s5871_s23 + $0x16a] sm:$0xff] }
 0x21d   : > { %5592 = vmatprep.subr.msk.bf16.mxu0 %vm5875_vm2, %v5590_v39 }
 0x223   : > { %5633 = vmatpush3.bf16.xpose.msk.msra.mxu1 %vm5875_vm2, %v5631_v30  ;;  %v4156_v30 = vld [vmem:[%s5871_s23 + $0xf2] sm:$0xff] }
 0x224   : > { %5595 = vmatpush3.bf16.xpose.msk.msra.mxu0 %vm5875_vm2, %v5593_v26  ;;  %5634 = vmatprep.subr.bf16.mxu1 %v7482_v22  ;;  %v4157_v26 = vld [vmem:[%s5871_s23 + $0xfa] sm:$0xff] }
 0x225   : > { %5598 = vmatprep.subr.msk.bf16.mxu0 %vm5875_vm2, %v5596_v27  ;;  %v5816_v27 = vmov 0  }
 0x226   : > { %5780 = vset.pattern.permute.xlu0 %v5816_v27 }
 0x227   : > { %3270 = vperm.xlu0 %5780, %v3267_v36  }
 0x22b   : > { %5637 = vmatpush3.bf16.xpose.msk.msra.mxu1 %vm5875_vm2, %v5635_v41  ;;  %v5707_v41 = vpack.c.bf16 %v4171_v46, %v4170_v54 }
 0x22c   : > { %5601 = vmatpush3.bf16.xpose.msk.msra.mxu0 %vm5875_vm2, %v5599_v45  ;;  %5638 = vmatprep.subr.bf16.mxu1 %v7482_v22  ;;  %v5667_v45 = vpack.c.bf16 %v4139_v42, %v4138_v19 }
 0x22d   : > { %5604 = vmatprep.subr.msk.bf16.mxu0 %vm5875_vm2, %v5602_v24  ;;  %v5670_v24 = vpack.c.bf16 %v4157_v26, %v4156_v30 }
 0x233   : > { %5641 = vmatpush3.bf16.xpose.msk.msra.mxu1 %vm5875_vm2, %v5639_v57  ;;  %v4159_v57 = vld [vmem:[%s5871_s23 + $0x10a] sm:$0xff] }
 0x234   : > { %5607 = vmatpush3.bf16.xpose.msk.msra.mxu0 %vm5875_vm2, %v5605_v55  ;;  %5642 = vmatprep.subr.bf16.mxu1 %v7482_v22  ;;  %v5676_v8 = vpack.c.bf16 %v4159_v57, %v4158_v17 }
 0x235   : > { %5610 = vmatprep.subr.msk.bf16.mxu0 %vm5875_vm2, %v5608_v21  ;;  %v5673_v21 = vpack.c.bf16 %v4141_v23, %v4140_v40 }
 0x23b   : > { %5645 = vmatpush3.bf16.xpose.msk.msra.mxu1 %vm5875_vm2, %v5643_v25  ;;  %v5679_v25 = vpack.c.bf16 %v4143_v63, %v4142_v37 }
 0x23c   : > { %5613 = vmatpush3.bf16.xpose.msk.msra.mxu0 %vm5875_vm2, %v5611_v38  ;;  %5694 = vmatprep.subr.bf16.mxu1 %v7482_v22  ;;  %v5682_v38 = vpack.c.bf16 %v4161_v59, %v4160_v48 }
 0x23d   : > { %5648 = vmatprep.subr.msk.bf16.mxu0 %vm5875_vm2, %v5646_v20  ;;  %v4177_v20 = vld [vmem:[%s5871_s23 + $0x19a] sm:$0xff] }
 0x23e   : > { %v5719_v5 = vpack.c.bf16 %v4177_v20, %v6980_v29 }
 0x242   : > { %4969 = vmatmul.mubr.msk.f32.vlgmr.msra.gmra.mrb[14].mxu1 %vm298_vm1, %v7126_v32 }
 0x243   : > { %4622 = vmatmul.mubr.msk.f32.vlgmr.msra.gmra.mrb[0].mxu0 %vm298_vm1, %v7126_v32  ;;  %5697 = vmatpush3.bf16.xpose.msk.msra.mxu1 %vm5875_vm2, %v5695_v0  ;;  %v4135_v32 = vld [vmem:[%s5871_s23 + $0x4a] sm:$0xff] }
 0x244   : > { %5651 = vmatpush3.bf16.xpose.msk.msra.mxu0 %vm5875_vm2, %v5649_v61  ;;  %5698 = vmatprep.subr.bf16.mxu1 %v7482_v22  ;;  %v5655_v49 = vpack.c.bf16 %v4135_v32, %v4134_v43  ;;  %v4179_v0 = vld [vmem:[%s5871_s23 + $0x1aa] sm:$0xff]  ;;  %v4146_v61 = vld [vmem:[%s5871_s23 + $0xa2] sm:$0xff] }
 0x245   : > { %5654 = vmatprep.subr.msk.bf16.mxu0 %vm5875_vm2, %v5652_v44  ;;  %5003 = vmatprep.mubr.msk.f32.mxu1 %vm5807_vm0, %v7492_v34  ;;  %v4168_v34 = vld [vmem:[%s5871_s23 + $0x152] sm:$0xff]  ;;  %v4147_v44 = vld [vmem:[%s5871_s23 + $0xaa] sm:$0xff]  ;;  %v5723_v52 = vpack.c.bf16 %v4179_v0, %v4178_v56 }
 0x246   : > { %4672 = vmatprep.mubr.msk.f32.mxu0 %vm298_vm1, %v7243_v47  ;;  %v5703_v6 = vpack.c.bf16 %v4169_v51, %v4168_v34  ;;  %v5691_v29 = vpack.c.bf16 %v4147_v44, %v4146_v61 }
 0x24b   : > { %5701 = vmatpush3.bf16.xpose.msk.msra.mxu1 %vm5875_vm2, %v5699_v58 }
 0x24c   : > { %5657 = vmatpush3.bf16.xpose.msk.msra.mxu0 %vm5875_vm2, %v5655_v49  ;;  %5702 = vmatprep.subr.bf16.mxu1 %v7482_v22 }
 0x24d   : > { %5660 = vmatprep.subr.msk.bf16.mxu0 %vm5875_vm2, %v5658_v50 }
 0x253   : > { %5705 = vmatpush3.bf16.xpose.msk.msra.mxu1 %vm5875_vm2, %v5703_v6 }
 0x254   : > { %5663 = vmatpush3.bf16.xpose.msk.msra.mxu0 %vm5875_vm2, %v5661_v11  ;;  %5706 = vmatprep.subr.bf16.mxu1 %v7482_v22 }
 0x255   : > { %v1892_v39 = vpop.f32.mrb[8].mxu1  ;;  %5666 = vmatprep.subr.msk.bf16.mxu0 %vm5875_vm2, %v5664_v12 }
 0x256   : > { %v1898_v13 = vadd.f32 %v1892_v39, %v7168_v33  ;;  %v4865_v28 = vpop.f32.mrb[9].mxu1  ;;  %v4172_v33 = vld [vmem:[%s5871_s23 + $0x172] sm:$0xff] }
 0x257   : > { %v5711_v55 = vpack.c.bf16 %v4173_v14, %v4172_v33 }
 0x25b   : > { %5709 = vmatpush3.bf16.xpose.msk.msra.mxu1 %vm5875_vm2, %v5707_v41 }
 0x25c   : > { %5669 = vmatpush3.bf16.xpose.msk.msra.mxu0 %vm5875_vm2, %v5667_v45  ;;  %5710 = vmatprep.subr.bf16.mxu1 %v7482_v22 }
 0x25d   : > { %5672 = vmatprep.subr.msk.bf16.mxu0 %vm5875_vm2, %v5670_v24 }
 0x263   : > { %5713 = vmatpush3.bf16.xpose.msk.msra.mxu1 %vm5875_vm2, %v5711_v55 }
 0x264   : > { %5675 = vmatpush3.bf16.xpose.msk.msra.mxu0 %vm5875_vm2, %v5673_v21  ;;  %5714 = vmatprep.subr.bf16.mxu1 %v7482_v22 }
 0x265   : > { %5678 = vmatprep.subr.msk.bf16.mxu0 %vm5875_vm2, %v5676_v8 }
 0x26b   : > { %5717 = vmatpush3.bf16.xpose.msk.msra.mxu1 %vm5875_vm2, %v5715_v7 }
 0x26c   : > { %5681 = vmatpush3.bf16.xpose.msk.msra.mxu0 %vm5875_vm2, %v5679_v25  ;;  %5718 = vmatprep.subr.bf16.mxu1 %v7482_v22 }
 0x26d   : > { %5684 = vmatprep.subr.msk.bf16.mxu0 %vm5875_vm2, %v5682_v38 }
 0x273   : > { %5721 = vmatpush3.bf16.xpose.msk.msra.mxu1 %vm5875_vm2, %v5719_v5 }
 0x274   : > { %5687 = vmatpush3.bf16.xpose.msk.msra.mxu0 %vm5875_vm2, %v5685_v60  ;;  %5722 = vmatprep.subr.bf16.mxu1 %v7482_v22 }
 0x275   : > { %5690 = vmatprep.subr.msk.bf16.mxu0 %vm5875_vm2, %v5688_v53 }
 0x27b   : > { %5725 = vmatpush3.bf16.xpose.msk.msra.mxu1 %vm5875_vm2, %v5723_v52 }
 0x27c   : > { %5693 = vmatpush3.bf16.xpose.msk.msra.mxu0 %vm5875_vm2, %v5691_v29 }
 0x282   : > { %5004 = vmatmul.mubr.msk.f32.vlgmr.msra.gmra.mrb[16].mxu1 %vm298_vm1, %v7243_v47 }
 0x283   : > { %4673 = vmatmul.mubr.msk.f32.vlgmr.msra.gmra.mrb[0].mxu0 %vm298_vm1, %v7243_v47 }
 0x295   : > { %v2234_v22 = vpop.f32.mrb[10].mxu1 }
 0x296   : > { %v2240_v35 = vadd.f32 %v2234_v22, %v1898_v13  ;;  %v4900_v43 = vpop.f32.mrb[11].mxu1 }
 0x2a6   : > { %v3271_v34 = vpop.permute.xlu0 %3270 }
 0x2d5   : > { %v2576_v32 = vpop.f32.mrb[12].mxu1 }
 0x2d6   : > { %v2582_v15 = vadd.f32 %v2576_v32, %v2240_v35  ;;  %v4935_v31 = vpop.f32.mrb[13].mxu1 }
 0x315   : > { %v2918_v58 = vpop.f32.mrb[14].mxu1 }
 0x316   : > { %v2924_v49 = vadd.f32 %v2918_v58, %v2582_v15  ;;  %v4970_v50 = vpop.f32.mrb[15].mxu1 }
 0x355   : > { %v3260_v51 = vpop.f32.mrb[16].mxu1 }
 0x356   : > { %v3266_v3 = vadd.f32 %v3260_v51, %v2924_v49  ;;  %v3189_v16 = vpop.f32.mrb[0].mxu0  ;;  %v5005_v18 = vpop.f32.mrb[17].mxu1 }
 0x357   : > { %v3273_v1 = vadd.f32 %v3271_v34, %v3189_v16  ;;  %v3191_v10 = vpop.f32.mrb[1].mxu0 }
 0x358   : > { %v3275_v47 = vadd.f32 %v3271_v34, %v3266_v3  ;;  %v3274_v6 = vadd.f32 %v3271_v34, %v3191_v10 }
 0x359   : > { %v3276_v11 = vmax.f32 %v3273_v1, 0.0 }
 0x35a   : > { %v3278_v12 = vmax.f32 %v3275_v47, 0.0  ;;  %v3277_v54 = vmax.f32 %v3274_v6, 0.0 }
 0x35b   : > { %3279 = vst [vmem:[%s192_s8] sm:$0xff] %v3276_v11 }
 0x35c   : > { %3281 = vst [vmem:[%s192_s8 + $0x10] sm:$0xff] %v3278_v12  ;;  %3280 = vst [vmem:[%s192_s8 + $0x8] sm:$0xff] %v3277_v54 }
 0x35d PF: > { %s13_s14 = sadd.s32 1, %s5803_s14   ;;  %s7598_s12 = smov %s5799_s13 }
 0x35e   : > { %p10_p5 = scmp.ge.s32.totalorder %s13_s14, 4   ;;  %s7599_s13 = smov %s7601_s15 }
 0x360   :  { %12 = sbr.rel (!%p10_p5) target bundleno = 2 (0x2), region = 71 }

</bundles_post_ra>
